<compile_context>
chip_gen: v7x
topology: tpu7x:2x2x1
jax: 0.10.0
libtpu: 0.0.40
codegen_flags: <defaults>
</compile_context>

<pallas_src>
import math

import jax
import jax.numpy as jnp
from jax.experimental import pallas as pl
from jax.experimental.pallas import tpu as pltpu

# ----------------------------- hyper-parameters ----------------------------
BATCH = 2
IN_CH = 3
IMG = 64
PATCH = 32                      # ViT-L/32 patch size (kept)
HIDDEN = 128                    # 1024 in ViT-L
HEADS = 4                       # 16 in ViT-L
HEAD_DIM = HIDDEN // HEADS
MLP_DIM = 256                   # 4096 in ViT-L
LAYERS = 2                      # 24 in ViT-L
NUM_CLASSES = 16                # 1000 in ViT-L
NCLS_PAD = 128                  # lane-dense classifier output (1024 at 1000 cls)
GRID_HW = IMG // PATCH
NUM_PATCH = GRID_HW * GRID_HW   # 4
SEQ = NUM_PATCH + 1             # 5 (class token + patches)
SEQ_PAD = 8                     # BATCH * SEQ_PAD = 16 matmul rows (bf16 vreg)
CPP = IN_CH * PATCH * PATCH     # flattened patch length (3072)
VEC_W = 3 * HIDDEN              # packed per-layer vector width (>= MLP_DIM)
HEADV_W = max(HIDDEN, NCLS_PAD)
LN_EPS = 1e-6                   # torchvision ViT uses LayerNorm(eps=1e-6)
NEG_INF = -1e30


# --------------------------------- kernel ----------------------------------
def _layernorm(x, g, b):
    mu = jnp.mean(x, axis=-1, keepdims=True)
    var = jnp.mean((x - mu) ** 2, axis=-1, keepdims=True)
    return (x - mu) * jax.lax.rsqrt(var + LN_EPS) * g + b


def _vit_kernel(patch_ref, convw_ref, base_ref, qkvw_ref, outw_ref,
                w1_ref, w2_ref, vec_ref, headv_ref, headw_ref,
                logits_ref, x_ref):
    """grid = (LAYERS,).  The activation lives in the VMEM scratch `x_ref` for
    the whole stack; each layer's weights are streamed (double-buffered) by the
    BlockSpec pipeline; constant-index inputs are fetched once."""
    layer = pl.program_id(0)

    # ---------- layer-0 prologue: conv_proj + [cls | patches | pad] + pos ----
    @pl.when(layer == 0)
    def _():
        p = patch_ref[...].reshape(BATCH * NUM_PATCH, CPP)             # bf16
        emb = jnp.dot(p, convw_ref[...], preferred_element_type=jnp.float32)
        emb = emb.reshape(BATCH, NUM_PATCH, HIDDEN)
        zpre = jnp.zeros((BATCH, 1, HIDDEN), jnp.float32)
        zpost = jnp.zeros((BATCH, SEQ_PAD - SEQ, HIDDEN), jnp.float32)
        seq = jnp.concatenate([zpre, emb, zpost], axis=1)              # (B,Sp,H)
        # base already holds: pos, class token (row 0), conv bias (patch rows)
        x_ref[...] = seq + base_ref[...]

    # --------------------------- encoder block -------------------------------
    vec = vec_ref[0]                                                   # (8, VEC_W)
    ln1_g, ln1_b = vec[0:1, :HIDDEN], vec[1:2, :HIDDEN]
    qkv_b = vec[2:3, :3 * HIDDEN]
    out_b = vec[3:4, :HIDDEN]
    ln2_g, ln2_b = vec[4:5, :HIDDEN], vec[5:6, :HIDDEN]
    mlp_b1 = vec[6:7, :MLP_DIM]
    mlp_b2 = vec[7:8, :HIDDEN]

    x = x_ref[...].reshape(BATCH * SEQ_PAD, HIDDEN)                    # f32

    # ---- self-attention, batched over BATCH*HEADS (no per-head matmuls) ----
    h = _layernorm(x, ln1_g, ln1_b)
    qkv = jnp.dot(h.astype(jnp.bfloat16), qkvw_ref[0],
                  preferred_element_type=jnp.float32) + qkv_b          # (B*S, 3H)
    qkv = qkv.reshape(BATCH, SEQ_PAD, 3 * HIDDEN).astype(jnp.bfloat16)

    def split_heads(off):   # lane slices + major-axis stack -> (HEADS*B, S, Dh)
        return jnp.stack(
            [qkv[:, :, off + hh * HEAD_DIM: off + (hh + 1) * HEAD_DIM]
             for hh in range(HEADS)], axis=0,
        ).reshape(HEADS * BATCH, SEQ_PAD, HEAD_DIM)

    q = split_heads(0)                  # 1/sqrt(Dh) already folded into weights
    k = split_heads(HIDDEN)
    v = split_heads(2 * HIDDEN)

    s = jnp.einsum('bqd,bkd->bqk', q, k,
                   preferred_element_type=jnp.float32)                 # (HB,S,S)
    col = jax.lax.broadcasted_iota(jnp.int32, (1, SEQ_PAD, SEQ_PAD), 2)
    s = jnp.where(col < SEQ, s, NEG_INF)                               # pad keys
    s = s - jnp.max(s, axis=-1, keepdims=True)
    p = jnp.exp(s)
    p = p * pl.reciprocal(jnp.sum(p, axis=-1, keepdims=True), approx=True)
    o = jnp.einsum('bqk,bkd->bqd', p.astype(jnp.bfloat16), v,
                   preferred_element_type=jnp.float32)                 # (HB,S,Dh)
    o = o.reshape(HEADS, BATCH, SEQ_PAD, HEAD_DIM)
    attn = jnp.concatenate([o[hh] for hh in range(HEADS)], axis=-1)    # (B,S,H)
    attn = attn.reshape(BATCH * SEQ_PAD, HIDDEN)

    # out_proj + residual (dropout is identity in eval mode)
    x = jnp.dot(attn.astype(jnp.bfloat16), outw_ref[0],
                preferred_element_type=jnp.float32) + out_b + x

    # --------------------------------- MLP -----------------------------------
    h2 = _layernorm(x, ln2_g, ln2_b)
    y = jnp.dot(h2.astype(jnp.bfloat16), w1_ref[0],
                preferred_element_type=jnp.float32) + mlp_b1
    # TODO(synk): torchvision nn.GELU() is exact erf-GELU; erf has no guaranteed
    # Pallas TPU lowering, so use the tanh approximation (small numerical diff).
    y = 0.5 * y * (1.0 + jnp.tanh(0.7978845608028654 * (y + 0.044715 * y * y * y)))
    x = jnp.dot(y.astype(jnp.bfloat16), w2_ref[0],
                preferred_element_type=jnp.float32) + mlp_b2 + x

    x_ref[...] = x.reshape(BATCH, SEQ_PAD, HIDDEN)

    # ------- last-layer epilogue: final LayerNorm + classifier head ---------
    @pl.when(layer == LAYERS - 1)
    def _():
        # LN + head on all (few) rows to keep plain 2-D matmul lowering; the
        # wrapper keeps only the class-token row and the first NUM_CLASSES lanes.
        hall = _layernorm(x, headv_ref[0:1, :HIDDEN], headv_ref[1:2, :HIDDEN])
        logits = jnp.dot(hall.astype(jnp.bfloat16), headw_ref[...],
                         preferred_element_type=jnp.float32) + headv_ref[2:3, :NCLS_PAD]
        logits_ref[...] = logits.reshape(BATCH, SEQ_PAD, NCLS_PAD)


# ------------------------------ pallas wrapper ------------------------------
def vit_forward(params, x):
    """x: NCHW float32 (B, C, H, W) -> logits (B, NUM_CLASSES)."""
    B, C, H, W = x.shape
    assert B == BATCH and C == IN_CH and H == IMG and W == IMG
    gh, gw = H // PATCH, W // PATCH

    # Patchify: (B,C,gh,P,gw,P) -> (B, gh*gw, C*P*P); (c, i, j) ordering matches
    # the flattened Conv2d weight layout, so conv_proj == patch @ W + b.
    patches = (
        x.reshape(B, C, gh, PATCH, gw, PATCH)
        .transpose(0, 2, 4, 1, 3, 5)
        .reshape(B, gh * gw, CPP)
        .astype(jnp.bfloat16)                      # halve the largest input DMA
    )

    def const_spec(shape):
        nd = len(shape)
        return pl.BlockSpec(shape, lambda l, _n=nd: (0,) * _n)

    def layer_spec(shape):
        nd = len(shape)
        return pl.BlockSpec((1,) + shape, lambda l, _n=nd: (l,) + (0,) * _n)

    L = params["layers"]
    logits_all = pl.pallas_call(
        _vit_kernel,
        out_shape=jax.ShapeDtypeStruct((BATCH, SEQ_PAD, NCLS_PAD), jnp.float32),
        grid=(LAYERS,),
        in_specs=[
            const_spec((BATCH, NUM_PATCH, CPP)),      # patches (bf16)
            const_spec((CPP, HIDDEN)),                # conv_w (bf16)
            const_spec((SEQ_PAD, HIDDEN)),            # base = cls + pos + conv_b
            layer_spec((HIDDEN, 3 * HIDDEN)),         # qkv_w (bf16)
            layer_spec((HIDDEN, HIDDEN)),             # out_w (bf16)
            layer_spec((HIDDEN, MLP_DIM)),            # mlp_w1 (bf16)
            layer_spec((MLP_DIM, HIDDEN)),            # mlp_w2 (bf16)
            layer_spec((8, VEC_W)),                   # packed per-layer vectors
            const_spec((3, HEADV_W)),                 # packed head ln_g/ln_b/bias
            const_spec((HIDDEN, NCLS_PAD)),           # head_w (bf16)
        ],
        out_specs=pl.BlockSpec((BATCH, SEQ_PAD, NCLS_PAD), lambda l: (0, 0, 0)),
        scratch_shapes=[pltpu.VMEM((BATCH, SEQ_PAD, HIDDEN), jnp.float32)],
        compiler_params=pltpu.CompilerParams(
            dimension_semantics=("arbitrary",)),      # carried layer loop
    )(patches, params["conv_w"], params["base"],
      L["qkv_w"], L["out_w"], L["mlp_w1"], L["mlp_w2"], L["vecs"],
      params["head_vecs"], params["head_w"])

    return logits_all[:, 0, :NUM_CLASSES]


# ------------------------------ parameter init ------------------------------
def init_params(key):
    def nrm(k, shape, dtype=jnp.float32, scale=0.02):
        return (scale * jax.random.normal(k, shape, jnp.float32)).astype(dtype)

    keys = iter(jax.random.split(key, 16))
    att_scale = 1.0 / math.sqrt(HEAD_DIM)

    # conv_proj: Conv2d(3, D, kernel=32, stride=32) as (CPP, HIDDEN) matmul;
    # its bias is folded into `base` below.
    conv_w = nrm(next(keys), (CPP, HIDDEN), jnp.bfloat16)
    conv_b = jnp.zeros((HIDDEN,), jnp.float32)
    cls_tok = nrm(next(keys), (HIDDEN,))
    pos = nrm(next(keys), (SEQ, HIDDEN))

    # base[s] = pos[s]  (+ class token at s=0, + conv bias at patch rows);
    # padded rows are zero.
    base = jnp.zeros((SEQ_PAD, HIDDEN), jnp.float32)
    base = base.at[:SEQ].set(pos)
    base = base.at[0].add(cls_tok)
    base = base.at[1:SEQ].add(conv_b)

    # Per-layer weights; 1/sqrt(HEAD_DIM) folded into the q columns of qkv.
    qkv_w = nrm(next(keys), (LAYERS, HIDDEN, 3 * HIDDEN))
    qkv_w = qkv_w.at[:, :, :HIDDEN].multiply(att_scale).astype(jnp.bfloat16)
    out_w = nrm(next(keys), (LAYERS, HIDDEN, HIDDEN), jnp.bfloat16)
    mlp_w1 = nrm(next(keys), (LAYERS, HIDDEN, MLP_DIM), jnp.bfloat16)
    mlp_w2 = nrm(next(keys), (LAYERS, MLP_DIM, HIDDEN), jnp.bfloat16)

    ln1_g = jnp.ones((LAYERS, HIDDEN), jnp.float32)
    ln1_b = jnp.zeros((LAYERS, HIDDEN), jnp.float32)
    qkv_b = jnp.zeros((LAYERS, 3 * HIDDEN), jnp.float32)
    qkv_b = qkv_b.at[:, :HIDDEN].multiply(att_scale)     # scale fold (q part)
    out_b = jnp.zeros((LAYERS, HIDDEN), jnp.float32)
    ln2_g = jnp.ones((LAYERS, HIDDEN), jnp.float32)
    ln2_b = jnp.zeros((LAYERS, HIDDEN), jnp.float32)
    mlp_b1 = jnp.zeros((LAYERS, MLP_DIM), jnp.float32)
    mlp_b2 = jnp.zeros((LAYERS, HIDDEN), jnp.float32)

    def padw(a, w=VEC_W):
        return jnp.pad(a, ((0, 0), (0, w - a.shape[-1])))

    # one packed (LAYERS, 8, VEC_W) array -> a single small DMA per layer step.
    vecs = jnp.stack(
        [padw(ln1_g), padw(ln1_b), padw(qkv_b), padw(out_b),
         padw(ln2_g), padw(ln2_b), padw(mlp_b1), padw(mlp_b2)], axis=1)

    # Classifier head, padded to NCLS_PAD lanes for dense stores.
    head_w = jnp.zeros((HIDDEN, NCLS_PAD), jnp.float32)
    head_w = head_w.at[:, :NUM_CLASSES].set(
        0.02 * jax.random.normal(next(keys), (HIDDEN, NUM_CLASSES), jnp.float32))
    head_w = head_w.astype(jnp.bfloat16)
    head_b = jnp.zeros((NCLS_PAD,), jnp.float32)
    ln_g = jnp.ones((HIDDEN,), jnp.float32)
    ln_b = jnp.zeros((HIDDEN,), jnp.float32)

    def padh(a, w=HEADV_W):
        return jnp.pad(a, ((0, w - a.shape[-1]),))

    head_vecs = jnp.stack([padh(ln_g), padh(ln_b), padh(head_b)], axis=0)

    return {
        "conv_w": conv_w,
        "base": base,
        "layers": {"qkv_w": qkv_w, "out_w": out_w,
                   "mlp_w1": mlp_w1, "mlp_w2": mlp_w2, "vecs": vecs},
        "head_vecs": head_vecs,
        "head_w": head_w,
    }


# ----------------------------------- main -----------------------------------
if __name__ == "__main__":
    key = jax.random.PRNGKey(0)
    k_x, k_p = jax.random.split(key)
    x = jax.random.normal(k_x, (BATCH, IN_CH, IMG, IMG), jnp.float32)  # NCHW
    params = init_params(k_p)

    fwd = jax.jit(vit_forward)
    logits = jax.block_until_ready(fwd(params, x))
    assert logits.shape == (BATCH, NUM_CLASSES)
    assert bool(jnp.all(jnp.isfinite(logits)))
    print("KERNEL_OK")
</pallas_src>

<mosaic_0001>
module attributes {stable_mosaic.version = 11 : i64} {
  func.func @_vit_kernel(%arg0: i32, %arg1: memref<2x4x3072xbf16, #tpu.memory_space<vmem>>, %arg2: memref<3072x128xbf16, #tpu.memory_space<vmem>>, %arg3: memref<8x128xf32, #tpu.memory_space<vmem>>, %arg4: memref<1x128x384xbf16, #tpu.memory_space<vmem>>, %arg5: memref<1x128x128xbf16, #tpu.memory_space<vmem>>, %arg6: memref<1x128x256xbf16, #tpu.memory_space<vmem>>, %arg7: memref<1x256x128xbf16, #tpu.memory_space<vmem>>, %arg8: memref<1x8x384xf32, #tpu.memory_space<vmem>>, %arg9: memref<3x128xf32, #tpu.memory_space<vmem>>, %arg10: memref<128x128xbf16, #tpu.memory_space<vmem>>, %arg11: memref<2x8x128xf32, #tpu.memory_space<vmem>>, %arg12: memref<2x8x128xf32, #tpu.memory_space<vmem>>) attributes {dimension_semantics = [#tpu.dimension_semantics<arbitrary>], iteration_bounds = array<i64: 2>, scalar_prefetch = 0 : i64, scratch_operands = 1 : i64, tpu.core_type = #tpu.core_type<tc>, window_params = [{pipeline_mode = #tpu.pipeline_mode<synchronous>, transform_indices = @transform_0, window_bounds = array<i64: 2, 4, 3072>}, {pipeline_mode = #tpu.pipeline_mode<synchronous>, transform_indices = @transform_1, window_bounds = array<i64: 3072, 128>}, {pipeline_mode = #tpu.pipeline_mode<synchronous>, transform_indices = @transform_2, window_bounds = array<i64: 8, 128>}, {transform_indices = @transform_3, window_bounds = array<i64: 1, 128, 384>}, {transform_indices = @transform_4, window_bounds = array<i64: 1, 128, 128>}, {transform_indices = @transform_5, window_bounds = array<i64: 1, 128, 256>}, {transform_indices = @transform_6, window_bounds = array<i64: 1, 256, 128>}, {transform_indices = @transform_7, window_bounds = array<i64: 1, 8, 384>}, {pipeline_mode = #tpu.pipeline_mode<synchronous>, transform_indices = @transform_8, window_bounds = array<i64: 3, 128>}, {pipeline_mode = #tpu.pipeline_mode<synchronous>, transform_indices = @transform_9, window_bounds = array<i64: 128, 128>}, {pipeline_mode = #tpu.pipeline_mode<synchronous>, transform_indices = @transform_10, window_bounds = array<i64: 2, 8, 128>}]} {
    %c0_i32 = arith.constant 0 : i32
    %0 = arith.cmpi eq, %arg0, %c0_i32 : i32
    %1 = arith.extui %0 : i1 to i32
    %c0_i32_0 = arith.constant 0 : i32
    %2 = arith.cmpi ne, %1, %c0_i32_0 : i32
    scf.if %2 {
      %c0_44 = arith.constant 0 : index
      %c0_45 = arith.constant 0 : index
      %c0_46 = arith.constant 0 : index
      %166 = vector.load %arg1[%c0_44, %c0_45, %c0_46] : memref<2x4x3072xbf16, #tpu.memory_space<vmem>>, vector<2x4x3072xbf16>
      %167 = vector.shape_cast %166 : vector<2x4x3072xbf16> to vector<8x3072xbf16>
      %c0_47 = arith.constant 0 : index
      %c0_48 = arith.constant 0 : index
      %168 = vector.load %arg2[%c0_47, %c0_48] : memref<3072x128xbf16, #tpu.memory_space<vmem>>, vector<3072x128xbf16>
      %cst_49 = arith.constant dense<0.000000e+00> : vector<8x128xf32>
      %169 = tpu.matmul %167, %168, %cst_49 {dimension_numbers = #tpu.dot_dimension_numbers<[1], [0], [0], [1], [0, 0, 1, 1], [], []>} : vector<8x3072xbf16>, vector<3072x128xbf16>, vector<8x128xf32> -> vector<8x128xf32>
      %170 = vector.shape_cast %169 : vector<8x128xf32> to vector<2x4x128xf32>
      %cst_50 = arith.constant 0.000000e+00 : f32
      %171 = vector.broadcast %cst_50 : f32 to vector<2x1x128xf32>
      %cst_51 = arith.constant 0.000000e+00 : f32
      %172 = vector.broadcast %cst_51 : f32 to vector<2x3x128xf32>
      %173 = tpu.concatenate %171, %170, %172 in 1 : vector<2x1x128xf32>, vector<2x4x128xf32>, vector<2x3x128xf32> -> vector<2x8x128xf32>
      %c0_52 = arith.constant 0 : index
      %c0_53 = arith.constant 0 : index
      %174 = vector.load %arg3[%c0_52, %c0_53] : memref<8x128xf32, #tpu.memory_space<vmem>>, vector<8x128xf32>
      %175 = vector.shape_cast %174 : vector<8x128xf32> to vector<1x8x128xf32>
      %176 = vector.broadcast %175 : vector<1x8x128xf32> to vector<2x8x128xf32>
      %177 = arith.addf %173, %176 : vector<2x8x128xf32>
      %c0_54 = arith.constant 0 : index
      %c0_55 = arith.constant 0 : index
      %c0_56 = arith.constant 0 : index
      %178 = vector.load %arg12[%c0_54, %c0_55, %c0_56] : memref<2x8x128xf32, #tpu.memory_space<vmem>>, vector<2x8x128xf32>
      tpu.vector_store %arg12[%c0_54, %c0_55, %c0_56], %177 {strides = array<i32>} : memref<2x8x128xf32, #tpu.memory_space<vmem>>, vector<2x8x128xf32>,
    } else {
    }
    %c0 = arith.constant 0 : index
    %c0_1 = arith.constant 0 : index
    %c0_2 = arith.constant 0 : index
    %3 = vector.load %arg8[%c0, %c0_1, %c0_2] : memref<1x8x384xf32, #tpu.memory_space<vmem>>, vector<1x8x384xf32>
    %4 = vector.shape_cast %3 : vector<1x8x384xf32> to vector<8x384xf32>
    %5 = vector.extract_strided_slice %4 {offsets = [0, 0], sizes = [1, 128], strides = [1, 1]} : vector<8x384xf32> to vector<1x128xf32>
    %6 = vector.extract_strided_slice %4 {offsets = [1, 0], sizes = [1, 128], strides = [1, 1]} : vector<8x384xf32> to vector<1x128xf32>
    %7 = vector.extract_strided_slice %4 {offsets = [2, 0], sizes = [1, 384], strides = [1, 1]} : vector<8x384xf32> to vector<1x384xf32>
    %8 = vector.extract_strided_slice %4 {offsets = [3, 0], sizes = [1, 128], strides = [1, 1]} : vector<8x384xf32> to vector<1x128xf32>
    %9 = vector.extract_strided_slice %4 {offsets = [4, 0], sizes = [1, 128], strides = [1, 1]} : vector<8x384xf32> to vector<1x128xf32>
    %10 = vector.extract_strided_slice %4 {offsets = [5, 0], sizes = [1, 128], strides = [1, 1]} : vector<8x384xf32> to vector<1x128xf32>
    %11 = vector.extract_strided_slice %4 {offsets = [6, 0], sizes = [1, 256], strides = [1, 1]} : vector<8x384xf32> to vector<1x256xf32>
    %12 = vector.extract_strided_slice %4 {offsets = [7, 0], sizes = [1, 128], strides = [1, 1]} : vector<8x384xf32> to vector<1x128xf32>
    %c0_3 = arith.constant 0 : index
    %c0_4 = arith.constant 0 : index
    %c0_5 = arith.constant 0 : index
    %13 = vector.load %arg12[%c0_3, %c0_4, %c0_5] : memref<2x8x128xf32, #tpu.memory_space<vmem>>, vector<2x8x128xf32>
    %14 = vector.shape_cast %13 : vector<2x8x128xf32> to vector<16x128xf32>
    %cst = arith.constant dense<0.000000e+00> : vector<16xf32>
    %15 = vector.multi_reduction <add>, %14, %cst [1] : vector<16x128xf32> to vector<16xf32>
    %16 = vector.shape_cast %15 : vector<16xf32> to vector<16x1xf32>
    %cst_6 = arith.constant 1.280000e+02 : f32
    %17 = vector.broadcast %cst_6 : f32 to vector<16x1xf32>
    %18 = arith.divf %16, %17 : vector<16x1xf32>
    %19 = vector.broadcast %18 : vector<16x1xf32> to vector<16x128xf32>
    %20 = arith.subf %14, %19 : vector<16x128xf32>
    %21 = arith.mulf %20, %20 : vector<16x128xf32>
    %cst_7 = arith.constant dense<0.000000e+00> : vector<16xf32>
    %22 = vector.multi_reduction <add>, %21, %cst_7 [1] : vector<16x128xf32> to vector<16xf32>
    %23 = vector.shape_cast %22 : vector<16xf32> to vector<16x1xf32>
    %cst_8 = arith.constant 1.280000e+02 : f32
    %24 = vector.broadcast %cst_8 : f32 to vector<16x1xf32>
    %25 = arith.divf %23, %24 : vector<16x1xf32>
    %26 = vector.broadcast %18 : vector<16x1xf32> to vector<16x128xf32>
    %27 = arith.subf %14, %26 : vector<16x128xf32>
    %cst_9 = arith.constant 9.99999997E-7 : f32
    %28 = vector.broadcast %cst_9 : f32 to vector<16x1xf32>
    %29 = arith.addf %25, %28 : vector<16x1xf32>
    %30 = math.rsqrt %29 : vector<16x1xf32>
    %31 = vector.broadcast %30 : vector<16x1xf32> to vector<16x128xf32>
    %32 = arith.mulf %27, %31 : vector<16x128xf32>
    %33 = vector.broadcast %5 : vector<1x128xf32> to vector<16x128xf32>
    %34 = arith.mulf %32, %33 : vector<16x128xf32>
    %35 = vector.broadcast %6 : vector<1x128xf32> to vector<16x128xf32>
    %36 = arith.addf %34, %35 : vector<16x128xf32>
    %37 = arith.truncf %36 : vector<16x128xf32> to vector<16x128xbf16>
    %c0_10 = arith.constant 0 : index
    %c0_11 = arith.constant 0 : index
    %c0_12 = arith.constant 0 : index
    %38 = vector.load %arg4[%c0_10, %c0_11, %c0_12] : memref<1x128x384xbf16, #tpu.memory_space<vmem>>, vector<1x128x384xbf16>
    %39 = vector.shape_cast %38 : vector<1x128x384xbf16> to vector<128x384xbf16>
    %cst_13 = arith.constant dense<0.000000e+00> : vector<16x384xf32>
    %40 = tpu.matmul %37, %39, %cst_13 {dimension_numbers = #tpu.dot_dimension_numbers<[1], [0], [0], [1], [0, 0, 1, 1], [], []>} : vector<16x128xbf16>, vector<128x384xbf16>, vector<16x384xf32> -> vector<16x384xf32>
    %41 = vector.broadcast %7 : vector<1x384xf32> to vector<16x384xf32>
    %42 = arith.addf %40, %41 : vector<16x384xf32>
    %43 = vector.shape_cast %42 : vector<16x384xf32> to vector<2x8x384xf32>
    %44 = arith.truncf %43 : vector<2x8x384xf32> to vector<2x8x384xbf16>
    %45 = vector.extract_strided_slice %44 {offsets = [0, 0, 0], sizes = [2, 8, 32], strides = [1, 1, 1]} : vector<2x8x384xbf16> to vector<2x8x32xbf16>
    %46 = vector.extract_strided_slice %44 {offsets = [0, 0, 32], sizes = [2, 8, 32], strides = [1, 1, 1]} : vector<2x8x384xbf16> to vector<2x8x32xbf16>
    %47 = vector.extract_strided_slice %44 {offsets = [0, 0, 64], sizes = [2, 8, 32], strides = [1, 1, 1]} : vector<2x8x384xbf16> to vector<2x8x32xbf16>
    %48 = vector.extract_strided_slice %44 {offsets = [0, 0, 96], sizes = [2, 8, 32], strides = [1, 1, 1]} : vector<2x8x384xbf16> to vector<2x8x32xbf16>
    %49 = vector.shape_cast %45 : vector<2x8x32xbf16> to vector<1x2x8x32xbf16>
    %50 = vector.shape_cast %46 : vector<2x8x32xbf16> to vector<1x2x8x32xbf16>
    %51 = vector.shape_cast %47 : vector<2x8x32xbf16> to vector<1x2x8x32xbf16>
    %52 = vector.shape_cast %48 : vector<2x8x32xbf16> to vector<1x2x8x32xbf16>
    %53 = tpu.concatenate %49, %50, %51, %52 in 0 : vector<1x2x8x32xbf16>, vector<1x2x8x32xbf16>, vector<1x2x8x32xbf16>, vector<1x2x8x32xbf16> -> vector<4x2x8x32xbf16>
    %54 = vector.shape_cast %53 : vector<4x2x8x32xbf16> to vector<8x8x32xbf16>
    %55 = vector.extract_strided_slice %44 {offsets = [0, 0, 128], sizes = [2, 8, 32], strides = [1, 1, 1]} : vector<2x8x384xbf16> to vector<2x8x32xbf16>
    %56 = vector.extract_strided_slice %44 {offsets = [0, 0, 160], sizes = [2, 8, 32], strides = [1, 1, 1]} : vector<2x8x384xbf16> to vector<2x8x32xbf16>
    %57 = vector.extract_strided_slice %44 {offsets = [0, 0, 192], sizes = [2, 8, 32], strides = [1, 1, 1]} : vector<2x8x384xbf16> to vector<2x8x32xbf16>
    %58 = vector.extract_strided_slice %44 {offsets = [0, 0, 224], sizes = [2, 8, 32], strides = [1, 1, 1]} : vector<2x8x384xbf16> to vector<2x8x32xbf16>
    %59 = vector.shape_cast %55 : vector<2x8x32xbf16> to vector<1x2x8x32xbf16>
    %60 = vector.shape_cast %56 : vector<2x8x32xbf16> to vector<1x2x8x32xbf16>
    %61 = vector.shape_cast %57 : vector<2x8x32xbf16> to vector<1x2x8x32xbf16>
    %62 = vector.shape_cast %58 : vector<2x8x32xbf16> to vector<1x2x8x32xbf16>
    %63 = tpu.concatenate %59, %60, %61, %62 in 0 : vector<1x2x8x32xbf16>, vector<1x2x8x32xbf16>, vector<1x2x8x32xbf16>, vector<1x2x8x32xbf16> -> vector<4x2x8x32xbf16>
    %64 = vector.shape_cast %63 : vector<4x2x8x32xbf16> to vector<8x8x32xbf16>
    %65 = vector.extract_strided_slice %44 {offsets = [0, 0, 256], sizes = [2, 8, 32], strides = [1, 1, 1]} : vector<2x8x384xbf16> to vector<2x8x32xbf16>
    %66 = vector.extract_strided_slice %44 {offsets = [0, 0, 288], sizes = [2, 8, 32], strides = [1, 1, 1]} : vector<2x8x384xbf16> to vector<2x8x32xbf16>
    %67 = vector.extract_strided_slice %44 {offsets = [0, 0, 320], sizes = [2, 8, 32], strides = [1, 1, 1]} : vector<2x8x384xbf16> to vector<2x8x32xbf16>
    %68 = vector.extract_strided_slice %44 {offsets = [0, 0, 352], sizes = [2, 8, 32], strides = [1, 1, 1]} : vector<2x8x384xbf16> to vector<2x8x32xbf16>
    %69 = vector.shape_cast %65 : vector<2x8x32xbf16> to vector<1x2x8x32xbf16>
    %70 = vector.shape_cast %66 : vector<2x8x32xbf16> to vector<1x2x8x32xbf16>
    %71 = vector.shape_cast %67 : vector<2x8x32xbf16> to vector<1x2x8x32xbf16>
    %72 = vector.shape_cast %68 : vector<2x8x32xbf16> to vector<1x2x8x32xbf16>
    %73 = tpu.concatenate %69, %70, %71, %72 in 0 : vector<1x2x8x32xbf16>, vector<1x2x8x32xbf16>, vector<1x2x8x32xbf16>, vector<1x2x8x32xbf16> -> vector<4x2x8x32xbf16>
    %74 = vector.shape_cast %73 : vector<4x2x8x32xbf16> to vector<8x8x32xbf16>
    "tpu.trace_start"() <{level = 10 : i32, message = "bqd,bkd->bqk"}> : () -> ()
    %cst_14 = arith.constant dense<0.000000e+00> : vector<8x8x8xf32>
    %75 = tpu.matmul %54, %64, %cst_14 {dimension_numbers = #tpu.dot_dimension_numbers<[2], [2], [1], [1], [0, 0, 0, 1, 1, 1], [0], [0]>} : vector<8x8x32xbf16>, vector<8x8x32xbf16>, vector<8x8x8xf32> -> vector<8x8x8xf32>
    "tpu.trace_stop"() : () -> ()
    %76 = tpu.iota {dimensions = array<i32: 2>} : vector<1x8x8xi32>
    %c5_i32 = arith.constant 5 : i32
    %77 = vector.broadcast %c5_i32 : i32 to vector<1x8x8xi32>
    %78 = arith.cmpi slt, %76, %77 : vector<1x8x8xi32>
    %cst_15 = arith.constant -1.000000e+30 : f32
    %79 = vector.shape_cast %78 : vector<1x8x8xi1> to vector<1x8x8xi1>
    %80 = vector.broadcast %79 : vector<1x8x8xi1> to vector<8x8x8xi1>
    %81 = vector.broadcast %cst_15 : f32 to vector<8x8x8xf32>
    %82 = arith.select %80, %75, %81 : vector<8x8x8xi1>, vector<8x8x8xf32>
    %cst_16 = arith.constant dense<0xFF800000> : vector<8x8xf32>
    %83 = vector.multi_reduction <maximumf>, %82, %cst_16 [2] : vector<8x8x8xf32> to vector<8x8xf32>
    %84 = vector.shape_cast %83 : vector<8x8xf32> to vector<8x8x1xf32>
    %85 = vector.broadcast %84 : vector<8x8x1xf32> to vector<8x8x8xf32>
    %86 = arith.subf %82, %85 : vector<8x8x8xf32>
    %87 = math.exp %86 : vector<8x8x8xf32>
    %cst_17 = arith.constant dense<0.000000e+00> : vector<8x8xf32>
    %88 = vector.multi_reduction <add>, %87, %cst_17 [2] : vector<8x8x8xf32> to vector<8x8xf32>
    %89 = vector.shape_cast %88 : vector<8x8xf32> to vector<8x8x1xf32>
    %90 = tpu.reciprocal %89 {approx = true} : vector<8x8x1xf32> -> vector<8x8x1xf32>
    %91 = vector.broadcast %90 : vector<8x8x1xf32> to vector<8x8x8xf32>
    %92 = arith.mulf %87, %91 : vector<8x8x8xf32>
    %93 = arith.truncf %92 : vector<8x8x8xf32> to vector<8x8x8xbf16>
    "tpu.trace_start"() <{level = 10 : i32, message = "bqk,bkd->bqd"}> : () -> ()
    %cst_18 = arith.constant dense<0.000000e+00> : vector<8x8x32xf32>
    %94 = tpu.matmul %93, %74, %cst_18 {dimension_numbers = #tpu.dot_dimension_numbers<[2], [1], [1], [2], [0, 0, 0, 1, 1, 2], [0], [0]>} : vector<8x8x8xbf16>, vector<8x8x32xbf16>, vector<8x8x32xf32> -> vector<8x8x32xf32>
    "tpu.trace_stop"() : () -> ()
    %95 = vector.shape_cast %94 : vector<8x8x32xf32> to vector<4x2x8x32xf32>
    %96 = vector.extract_strided_slice %95 {offsets = [0, 0, 0, 0], sizes = [1, 2, 8, 32], strides = [1, 1, 1, 1]} : vector<4x2x8x32xf32> to vector<1x2x8x32xf32>
    %97 = vector.shape_cast %96 : vector<1x2x8x32xf32> to vector<2x8x32xf32>
    %98 = vector.extract_strided_slice %95 {offsets = [1, 0, 0, 0], sizes = [1, 2, 8, 32], strides = [1, 1, 1, 1]} : vector<4x2x8x32xf32> to vector<1x2x8x32xf32>
    %99 = vector.shape_cast %98 : vector<1x2x8x32xf32> to vector<2x8x32xf32>
    %100 = vector.extract_strided_slice %95 {offsets = [2, 0, 0, 0], sizes = [1, 2, 8, 32], strides = [1, 1, 1, 1]} : vector<4x2x8x32xf32> to vector<1x2x8x32xf32>
    %101 = vector.shape_cast %100 : vector<1x2x8x32xf32> to vector<2x8x32xf32>
    %102 = vector.extract_strided_slice %95 {offsets = [3, 0, 0, 0], sizes = [1, 2, 8, 32], strides = [1, 1, 1, 1]} : vector<4x2x8x32xf32> to vector<1x2x8x32xf32>
    %103 = vector.shape_cast %102 : vector<1x2x8x32xf32> to vector<2x8x32xf32>
    %104 = tpu.concatenate %97, %99, %101, %103 in 2 : vector<2x8x32xf32>, vector<2x8x32xf32>, vector<2x8x32xf32>, vector<2x8x32xf32> -> vector<2x8x128xf32>
    %105 = vector.shape_cast %104 : vector<2x8x128xf32> to vector<16x128xf32>
    %106 = arith.truncf %105 : vector<16x128xf32> to vector<16x128xbf16>
    %c0_19 = arith.constant 0 : index
    %c0_20 = arith.constant 0 : index
    %c0_21 = arith.constant 0 : index
    %107 = vector.load %arg5[%c0_19, %c0_20, %c0_21] : memref<1x128x128xbf16, #tpu.memory_space<vmem>>, vector<1x128x128xbf16>
    %108 = vector.shape_cast %107 : vector<1x128x128xbf16> to vector<128x128xbf16>
    %cst_22 = arith.constant dense<0.000000e+00> : vector<16x128xf32>
    %109 = tpu.matmul %106, %108, %cst_22 {dimension_numbers = #tpu.dot_dimension_numbers<[1], [0], [0], [1], [0, 0, 1, 1], [], []>} : vector<16x128xbf16>, vector<128x128xbf16>, vector<16x128xf32> -> vector<16x128xf32>
    %110 = vector.broadcast %8 : vector<1x128xf32> to vector<16x128xf32>
    %111 = arith.addf %109, %110 : vector<16x128xf32>
    %112 = arith.addf %111, %14 : vector<16x128xf32>
    %cst_23 = arith.constant dense<0.000000e+00> : vector<16xf32>
    %113 = vector.multi_reduction <add>, %112, %cst_23 [1] : vector<16x128xf32> to vector<16xf32>
    %114 = vector.shape_cast %113 : vector<16xf32> to vector<16x1xf32>
    %cst_24 = arith.constant 1.280000e+02 : f32
    %115 = vector.broadcast %cst_24 : f32 to vector<16x1xf32>
    %116 = arith.divf %114, %115 : vector<16x1xf32>
    %117 = vector.broadcast %116 : vector<16x1xf32> to vector<16x128xf32>
    %118 = arith.subf %112, %117 : vector<16x128xf32>
    %119 = arith.mulf %118, %118 : vector<16x128xf32>
    %cst_25 = arith.constant dense<0.000000e+00> : vector<16xf32>
    %120 = vector.multi_reduction <add>, %119, %cst_25 [1] : vector<16x128xf32> to vector<16xf32>
    %121 = vector.shape_cast %120 : vector<16xf32> to vector<16x1xf32>
    %cst_26 = arith.constant 1.280000e+02 : f32
    %122 = vector.broadcast %cst_26 : f32 to vector<16x1xf32>
    %123 = arith.divf %121, %122 : vector<16x1xf32>
    %124 = vector.broadcast %116 : vector<16x1xf32> to vector<16x128xf32>
    %125 = arith.subf %112, %124 : vector<16x128xf32>
    %cst_27 = arith.constant 9.99999997E-7 : f32
    %126 = vector.broadcast %cst_27 : f32 to vector<16x1xf32>
    %127 = arith.addf %123, %126 : vector<16x1xf32>
    %128 = math.rsqrt %127 : vector<16x1xf32>
    %129 = vector.broadcast %128 : vector<16x1xf32> to vector<16x128xf32>
    %130 = arith.mulf %125, %129 : vector<16x128xf32>
    %131 = vector.broadcast %9 : vector<1x128xf32> to vector<16x128xf32>
    %132 = arith.mulf %130, %131 : vector<16x128xf32>
    %133 = vector.broadcast %10 : vector<1x128xf32> to vector<16x128xf32>
    %134 = arith.addf %132, %133 : vector<16x128xf32>
    %135 = arith.truncf %134 : vector<16x128xf32> to vector<16x128xbf16>
    %c0_28 = arith.constant 0 : index
    %c0_29 = arith.constant 0 : index
    %c0_30 = arith.constant 0 : index
    %136 = vector.load %arg6[%c0_28, %c0_29, %c0_30] : memref<1x128x256xbf16, #tpu.memory_space<vmem>>, vector<1x128x256xbf16>
    %137 = vector.shape_cast %136 : vector<1x128x256xbf16> to vector<128x256xbf16>
    %cst_31 = arith.constant dense<0.000000e+00> : vector<16x256xf32>
    %138 = tpu.matmul %135, %137, %cst_31 {dimension_numbers = #tpu.dot_dimension_numbers<[1], [0], [0], [1], [0, 0, 1, 1], [], []>} : vector<16x128xbf16>, vector<128x256xbf16>, vector<16x256xf32> -> vector<16x256xf32>
    %139 = vector.broadcast %11 : vector<1x256xf32> to vector<16x256xf32>
    %140 = arith.addf %138, %139 : vector<16x256xf32>
    %cst_32 = arith.constant 5.000000e-01 : f32
    %141 = vector.broadcast %cst_32 : f32 to vector<16x256xf32>
    %142 = arith.mulf %141, %140 : vector<16x256xf32>
    %cst_33 = arith.constant 4.471500e-02 : f32
    %143 = vector.broadcast %cst_33 : f32 to vector<16x256xf32>
    %144 = arith.mulf %143, %140 : vector<16x256xf32>
    %145 = arith.mulf %144, %140 : vector<16x256xf32>
    %146 = arith.mulf %145, %140 : vector<16x256xf32>
    %147 = arith.addf %140, %146 : vector<16x256xf32>
    %cst_34 = arith.constant 0.797884583 : f32
    %148 = vector.broadcast %cst_34 : f32 to vector<16x256xf32>
    %149 = arith.mulf %148, %147 : vector<16x256xf32>
    %150 = math.tanh %149 : vector<16x256xf32>
    %cst_35 = arith.constant 1.000000e+00 : f32
    %151 = vector.broadcast %cst_35 : f32 to vector<16x256xf32>
    %152 = arith.addf %151, %150 : vector<16x256xf32>
    %153 = arith.mulf %142, %152 : vector<16x256xf32>
    %154 = arith.truncf %153 : vector<16x256xf32> to vector<16x256xbf16>
    %c0_36 = arith.constant 0 : index
    %c0_37 = arith.constant 0 : index
    %c0_38 = arith.constant 0 : index
    %155 = vector.load %arg7[%c0_36, %c0_37, %c0_38] : memref<1x256x128xbf16, #tpu.memory_space<vmem>>, vector<1x256x128xbf16>
    %156 = vector.shape_cast %155 : vector<1x256x128xbf16> to vector<256x128xbf16>
    %cst_39 = arith.constant dense<0.000000e+00> : vector<16x128xf32>
    %157 = tpu.matmul %154, %156, %cst_39 {dimension_numbers = #tpu.dot_dimension_numbers<[1], [0], [0], [1], [0, 0, 1, 1], [], []>} : vector<16x256xbf16>, vector<256x128xbf16>, vector<16x128xf32> -> vector<16x128xf32>
    %158 = vector.broadcast %12 : vector<1x128xf32> to vector<16x128xf32>
    %159 = arith.addf %157, %158 : vector<16x128xf32>
    %160 = arith.addf %159, %112 : vector<16x128xf32>
    %161 = vector.shape_cast %160 : vector<16x128xf32> to vector<2x8x128xf32>
    %c0_40 = arith.constant 0 : index
    %c0_41 = arith.constant 0 : index
    %c0_42 = arith.constant 0 : index
    %162 = vector.load %arg12[%c0_40, %c0_41, %c0_42] : memref<2x8x128xf32, #tpu.memory_space<vmem>>, vector<2x8x128xf32>
    tpu.vector_store %arg12[%c0_40, %c0_41, %c0_42], %161 {strides = array<i32>} : memref<2x8x128xf32, #tpu.memory_space<vmem>>, vector<2x8x128xf32>,
    %c1_i32 = arith.constant 1 : i32
    %163 = arith.cmpi eq, %arg0, %c1_i32 : i32
    %164 = arith.extui %163 : i1 to i32
    %c0_i32_43 = arith.constant 0 : i32
    %165 = arith.cmpi ne, %164, %c0_i32_43 : i32
    scf.if %165 {
      %c0_44 = arith.constant 0 : index
      %c0_45 = arith.constant 0 : index
      %166 = vector.load %arg9[%c0_44, %c0_45] : memref<3x128xf32, #tpu.memory_space<vmem>>, vector<1x128xf32>
      %c1 = arith.constant 1 : index
      %c0_46 = arith.constant 0 : index
      %167 = vector.load %arg9[%c1, %c0_46] : memref<3x128xf32, #tpu.memory_space<vmem>>, vector<1x128xf32>
      %cst_47 = arith.constant dense<0.000000e+00> : vector<16xf32>
      %168 = vector.multi_reduction <add>, %160, %cst_47 [1] : vector<16x128xf32> to vector<16xf32>
      %169 = vector.shape_cast %168 : vector<16xf32> to vector<16x1xf32>
      %cst_48 = arith.constant 1.280000e+02 : f32
      %170 = vector.broadcast %cst_48 : f32 to vector<16x1xf32>
      %171 = arith.divf %169, %170 : vector<16x1xf32>
      %172 = vector.broadcast %171 : vector<16x1xf32> to vector<16x128xf32>
      %173 = arith.subf %160, %172 : vector<16x128xf32>
      %174 = arith.mulf %173, %173 : vector<16x128xf32>
      %cst_49 = arith.constant dense<0.000000e+00> : vector<16xf32>
      %175 = vector.multi_reduction <add>, %174, %cst_49 [1] : vector<16x128xf32> to vector<16xf32>
      %176 = vector.shape_cast %175 : vector<16xf32> to vector<16x1xf32>
      %cst_50 = arith.constant 1.280000e+02 : f32
      %177 = vector.broadcast %cst_50 : f32 to vector<16x1xf32>
      %178 = arith.divf %176, %177 : vector<16x1xf32>
      %179 = vector.broadcast %171 : vector<16x1xf32> to vector<16x128xf32>
      %180 = arith.subf %160, %179 : vector<16x128xf32>
      %cst_51 = arith.constant 9.99999997E-7 : f32
      %181 = vector.broadcast %cst_51 : f32 to vector<16x1xf32>
      %182 = arith.addf %178, %181 : vector<16x1xf32>
      %183 = math.rsqrt %182 : vector<16x1xf32>
      %184 = vector.broadcast %183 : vector<16x1xf32> to vector<16x128xf32>
      %185 = arith.mulf %180, %184 : vector<16x128xf32>
      %186 = vector.broadcast %166 : vector<1x128xf32> to vector<16x128xf32>
      %187 = arith.mulf %185, %186 : vector<16x128xf32>
      %188 = vector.broadcast %167 : vector<1x128xf32> to vector<16x128xf32>
      %189 = arith.addf %187, %188 : vector<16x128xf32>
      %190 = arith.truncf %189 : vector<16x128xf32> to vector<16x128xbf16>
      %c0_52 = arith.constant 0 : index
      %c0_53 = arith.constant 0 : index
      %191 = vector.load %arg10[%c0_52, %c0_53] : memref<128x128xbf16, #tpu.memory_space<vmem>>, vector<128x128xbf16>
      %cst_54 = arith.constant dense<0.000000e+00> : vector<16x128xf32>
      %192 = tpu.matmul %190, %191, %cst_54 {dimension_numbers = #tpu.dot_dimension_numbers<[1], [0], [0], [1], [0, 0, 1, 1], [], []>} : vector<16x128xbf16>, vector<128x128xbf16>, vector<16x128xf32> -> vector<16x128xf32>
      %c2 = arith.constant 2 : index
      %c0_55 = arith.constant 0 : index
      %193 = vector.load %arg9[%c2, %c0_55] : memref<3x128xf32, #tpu.memory_space<vmem>>, vector<1x128xf32>
      %194 = vector.broadcast %193 : vector<1x128xf32> to vector<16x128xf32>
      %195 = arith.addf %192, %194 : vector<16x128xf32>
      %196 = vector.shape_cast %195 : vector<16x128xf32> to vector<2x8x128xf32>
      %c0_56 = arith.constant 0 : index
      %c0_57 = arith.constant 0 : index
      %c0_58 = arith.constant 0 : index
      %197 = vector.load %arg11[%c0_56, %c0_57, %c0_58] : memref<2x8x128xf32, #tpu.memory_space<vmem>>, vector<2x8x128xf32>
      tpu.vector_store %arg11[%c0_56, %c0_57, %c0_58], %196 {strides = array<i32>} : memref<2x8x128xf32, #tpu.memory_space<vmem>>, vector<2x8x128xf32>,
    } else {
    }
    return
  }
  func.func @transform_0(%arg0: i32) -> (i32, i32, i32) {
    %c0_i32 = arith.constant 0 : i32
    %c0_i32_0 = arith.constant 0 : i32
    %c0_i32_1 = arith.constant 0 : i32
    %c0_i32_2 = arith.constant 0 : i32
    return %c0_i32, %c0_i32_0, %c0_i32_1 : i32, i32, i32
  }
  func.func @transform_1(%arg0: i32) -> (i32, i32) {
    %c0_i32 = arith.constant 0 : i32
    %c0_i32_0 = arith.constant 0 : i32
    %c0_i32_1 = arith.constant 0 : i32
    return %c0_i32, %c0_i32_0 : i32, i32
  }
  func.func @transform_2(%arg0: i32) -> (i32, i32) {
    %c0_i32 = arith.constant 0 : i32
    %c0_i32_0 = arith.constant 0 : i32
    %c0_i32_1 = arith.constant 0 : i32
    return %c0_i32, %c0_i32_0 : i32, i32
  }
  func.func @transform_3(%arg0: i32) -> (i32, i32, i32) {
    %c0_i32 = arith.constant 0 : i32
    %c0_i32_0 = arith.constant 0 : i32
    %c0_i32_1 = arith.constant 0 : i32
    return %arg0, %c0_i32, %c0_i32_0 : i32, i32, i32
  }
  func.func @transform_4(%arg0: i32) -> (i32, i32, i32) {
    %c0_i32 = arith.constant 0 : i32
    %c0_i32_0 = arith.constant 0 : i32
    %c0_i32_1 = arith.constant 0 : i32
    return %arg0, %c0_i32, %c0_i32_0 : i32, i32, i32
  }
  func.func @transform_5(%arg0: i32) -> (i32, i32, i32) {
    %c0_i32 = arith.constant 0 : i32
    %c0_i32_0 = arith.constant 0 : i32
    %c0_i32_1 = arith.constant 0 : i32
    return %arg0, %c0_i32, %c0_i32_0 : i32, i32, i32
  }
  func.func @transform_6(%arg0: i32) -> (i32, i32, i32) {
    %c0_i32 = arith.constant 0 : i32
    %c0_i32_0 = arith.constant 0 : i32
    %c0_i32_1 = arith.constant 0 : i32
    return %arg0, %c0_i32, %c0_i32_0 : i32, i32, i32
  }
  func.func @transform_7(%arg0: i32) -> (i32, i32, i32) {
    %c0_i32 = arith.constant 0 : i32
    %c0_i32_0 = arith.constant 0 : i32
    %c0_i32_1 = arith.constant 0 : i32
    return %arg0, %c0_i32, %c0_i32_0 : i32, i32, i32
  }
  func.func @transform_8(%arg0: i32) -> (i32, i32) {
    %c0_i32 = arith.constant 0 : i32
    %c0_i32_0 = arith.constant 0 : i32
    %c0_i32_1 = arith.constant 0 : i32
    return %c0_i32, %c0_i32_0 : i32, i32
  }
  func.func @transform_9(%arg0: i32) -> (i32, i32) {
    %c0_i32 = arith.constant 0 : i32
    %c0_i32_0 = arith.constant 0 : i32
    %c0_i32_1 = arith.constant 0 : i32
    return %c0_i32, %c0_i32_0 : i32, i32
  }
  func.func @transform_10(%arg0: i32) -> (i32, i32, i32) {
    %c0_i32 = arith.constant 0 : i32
    %c0_i32_0 = arith.constant 0 : i32
    %c0_i32_1 = arith.constant 0 : i32
    %c0_i32_2 = arith.constant 0 : i32
    return %c0_i32, %c0_i32_0, %c0_i32_1 : i32, i32, i32
  }
}

</mosaic_0001>

<bundles_post_ra>
// kernel: vit_forward.1
= control target key start
LH: loop header
LB: loop body
LE: loop exit
PB: predicated region body
PF: predicated region fallthrough
CT: control target
= control target key end

     0   :  { %s7177_s0 = inlined_call_operand.vmem [shape: bf16[2,4,3072], index: 0, kind: input, shape index: {}]   ;;  %s7178_s1 = inlined_call_operand.vmem [shape: bf16[3072,128], index: 1, kind: input, shape index: {}]   ;;  %s7179_s2 = inlined_call_operand.vmem [shape: f32[8,128], index: 2, kind: input, shape index: {}]   ;;  %s7180_s3 = inlined_call_operand.vmem [shape: bf16[2,128,384], index: 3, kind: input, shape index: {}]   ;;  %s7181_s4 = inlined_call_operand.vmem [shape: bf16[2,128,128], index: 4, kind: input, shape index: {}]   ;;  %s7182_s5 = inlined_call_operand.vmem [shape: bf16[2,128,256], index: 5, kind: input, shape index: {}]   ;;  %s7183_s6 = inlined_call_operand.hbm [shape: bf16[2,256,128], index: 6, kind: input, shape index: {}]   ;;  %s7184_s7 = inlined_call_operand.vmem [shape: f32[2,8,384], index: 7, kind: input, shape index: {}]   ;;  %s7185_s8 = inlined_call_operand.hbm [shape: f32[3,128], index: 8, kind: input, shape index: {}]   ;;  %s7186_s9 = inlined_call_operand.vmem [shape: bf16[128,128], index: 9, kind: input, shape index: {}]   ;;  %s7187_s10 = inlined_call_operand.vmem [shape: f32[2,8,128], index: 10, kind: output, shape index: {}]  }
   0x1   :  { %7192 = sst [smem:[#allocation10_spill]] %s7183_s6 }
   0x2   :  { %7193 = sst [smem:[#allocation11_spill]] %s7185_s8 }
   0x3   :  { %15 = vsyncpa [#allocation4], 0 }
   0x4   :  { %17 = vsyncpa [#allocation4 + $0x1], 0 }
   0x5   :  { %18 = vsyncpa [#allocation6], 0  ;;  %s6040_s13 = smov 0   ;;  %s6042_s14 = smov 0  }
   0x6   :  { %s6044_s15 = smov 0   ;;  %s6046_s16 = smov 0  }
   0x7 LB: > { %s6059_s17 = sadd.s32 4294967295, %s5970_s16   ;;  %s6062_s18 = sadd.s32 1, %s5970_s16   ;;  %s5970_s16 = sphi %s6046_s16, %s7212_s16   ;;  %s5966_s15 = sphi %s6044_s15, %s7211_s15   ;;  %s5962_s14 = sphi %s6042_s14, %s7210_s14   ;;  %s5958_s13 = sphi %s6040_s13, %s7209_s13  }
   0x8   : > { %s169_s19 = ssub.s32 %s5970_s16, %s6062_s18  ;;  %s172_s20 = sadd.s32 1, %s5966_s15 }
   0x9   : > { %p170_p0 = scmp.eq.s32.totalorder %s169_s19, 0  ;;  %p179_p1 = scmp.ne.s32.totalorder %s5966_s15, %s5962_s14 }
   0xa   : > { %p180_p2 = scmp.eq.s32.totalorder %s5970_s16, 0  ;;  %p185_p3 = scmp.ne.s32.totalorder %s5962_s14, %s5958_s13 }
   0xb   : > { %s6072_s21 = scalar_select %p170_p0, %s5966_s15, %s172_s20  }
   0xc   : > { %p6074_p4 = por %p180_p2, %p179_p1  ;;  %p7188_p5 = scmp.eq.s32.totalorder %s6059_s17, 0 }
   0xd   : > { %7194 = sst [smem:[#allocation9_spill]] %s6072_s21  ;;  %p4637_p6 = scmp.ge.s32.totalorder %s5970_s16, 1 }
   0xe   : > { %p285_p7 = scmp.lt.s32.totalorder %s5970_s16, 3  ;;  %p6083_p8 = por %p7188_p5, %p185_p3 }
   0xf   : > { %s5972_s25 = smov [#allocation5]   ;;  %p5460_p12 = scmp.lt.s32.totalorder %s5970_s16, 2 }
  0x10   : > { %s7196_s23 = scalar_select %p6083_p8, 1, 0 }
  0x11   : > { %p6088_p10 = pnand %p4637_p6, %p285_p7  ;;  %s307_s26 = sshll.u32 %s5972_s25, 4  ;;  %s308_s26 = int_to_ptr.vmem [resolvable:$true] %s307_s26 }
  0x12   : > { %s345_s27 = sand.u32 1, %s5966_s15   ;;  %p6104_p0 = pnand %p5460_p12, %p6074_p4 }
  0x13   : > { %s7197_s24 = scalar_select %p6088_p10, 1, 0 }
  0x14   : > { %p5451_p11 = pneg %p6088_p10  ;;  %s4640_s30 = sshll.u32 %s345_s27, 7 }
  0x15   : > { %s7199_s29 = scalar_select %p6104_p0, 1, 0 }
  0x16   : > { %p6098_p13 = pnand %p5451_p11, %p7188_p5  ;;  %s7200_s8 = sld [smem:[#allocation11_spill]] }
  0x18   : > { %p5876_p2 = pneg %p6098_p13 }
  0x1c   : > { %s5874_s13 = scalar_lea.hbm %s7200_s8, 64 }
  0x1d   : > { %p5875_p1 = scmp.ne.s32.totalorder %s7200_s8, %s5874_s13  ;;  %p5881_p4 = scmp.lt.u32.totalorder %s5874_s13, %s7200_s8 }
  0x1f   : > { %p5877_p3 = pnand %p5876_p2, %p5875_p1 }
  0x21   : > { %p5878_p6 = pneg %p5877_p3 }
  0x23   : > { %p5883_p7 = pnand %p5881_p4, %p5878_p6 }
  0x25   : > { %5886 = shalt.err (!%p5883_p7)
}
  0x26   : > { %s5887_s21 = scalar_lea.vmem %s308_s26, 64  ;;  %p5895_p5 = scmp.lt.s32.totalorder %s308_s26, %s308_s26 }
  0x27   : > { %p5888_p11 = scmp.ne.s32.totalorder %s308_s26, %s5887_s21  ;;  %p5896_p8 = scmp.lt.s32.totalorder %s5887_s21, %s5887_s21 }
  0x29   : > { %p5890_p12 = pnand %p5888_p11, %p5876_p2  ;;  %p5897_p10 = por %p5896_p8, %p5895_p5 }
  0x2b   : > { %p5891_p9 = pneg %p5890_p12 }
  0x2d   : > { %p5898_p0 = pnand %p5897_p10, %p5891_p9 }
  0x2f   : > { %5901 = shalt.err (!%p5898_p0)
}
  0x30   : > { %5454 = dma.hbm_to_vmem [thread:$0]  (!%p6098_p13), %s7200_s8, 64, %s308_s26, [#allocation6]  }
  0x31   : > { %s4939_s13 = sshll.u32 %s5970_s16, 11  ;;  %s7201_s6 = sld [smem:[#allocation10_spill]] }
  0x32   : > { %s349_s21 = scalar_lea.vmem [#allocation3], %s4640_s30  ;;  %s6132_s28 = scalar_lea.sflag [#allocation4], %s345_s27 }
  0x33   : > { %s356_s22 = sshll.u32 %s349_s21, 4  ;;  %p7202_p8 = scmp.ne.s32.totalorder %s7199_s29, 0  ;;  %s6130_s22 = int_to_ptr.vmem [resolvable:$true] %s356_s22 }
  0x35   : > { %p5904_p9 = pneg %p7202_p8 }
  0x37   : > { %s6128_s25 = scalar_lea.hbm %s7201_s6, %s4939_s13  ;;  %s5907_s12 = scalar_lea.hbm %s7201_s6, 4096 }
  0x38   : > { %s5902_s11 = scalar_lea.hbm %s6128_s25, 2048  ;;  %p5908_p0 = scmp.lt.u32.totalorder %s6128_s25, %s7201_s6 }
  0x39   : > { %p5903_p5 = scmp.ne.s32.totalorder %s6128_s25, %s5902_s11  ;;  %p5909_p1 = scmp.lt.u32.totalorder %s5907_s12, %s5902_s11 }
  0x3a   : > { %p5911_p3 = scmp.lt.u32.totalorder %s5902_s11, %s6128_s25 }
  0x3b   : > { %p5905_p10 = pnand %p5904_p9, %p5903_p5  ;;  %p5910_p2 = por %p5909_p1, %p5908_p0 }
  0x3d   : > { %p5906_p13 = pneg %p5905_p10  ;;  %p5912_p6 = por %p5911_p3, %p5910_p2 }
  0x3f   : > { %p5913_p4 = pnand %p5912_p6, %p5906_p13 }
  0x41   : > { %5916 = shalt.err (!%p5913_p4)
}
  0x42   : > { %s5917_s27 = scalar_lea.vmem %s6130_s22, 2048  ;;  %s5973_s30 = smov [#allocation3]  }
  0x43   : > { %p5918_p7 = scmp.ne.s32.totalorder %s6130_s22, %s5917_s27  ;;  %s5922_s20 = sshll.u32 %s5973_s30, 4  ;;  %s5923_s20 = int_to_ptr.vmem [resolvable:$false] %s5922_s20 }
  0x44   : > { %s5924_s21 = scalar_lea.vmem %s5923_s20, 4096  ;;  %p5925_p5 = scmp.lt.s32.totalorder %s6130_s22, %s5923_s20 }
  0x45   : > { %p5920_p11 = pnand %p5918_p7, %p5904_p9  ;;  %p5926_p10 = scmp.lt.s32.totalorder %s5924_s21, %s5917_s27 }
  0x47   : > { %p5921_p12 = pneg %p5920_p11  ;;  %p5927_p0 = por %p5926_p10, %p5925_p5 }
  0x49   : > { %p5928_p1 = pnand %p5927_p0, %p5921_p12 }
  0x4b   : > { %5931 = shalt.err (!%p5928_p1)
}
  0x4c   : > { %s5974_s11 = smov 64   ;;  %s5975_s16 = smov 4  }
  0x4d   : > { %5458 = dma.hbm_to_vmem [thread:$0]  (!%p7202_p8), %s6128_s25, 2048, %s6130_s22, %s6132_s28, %s5974_s11, %s5974_s11, %s5975_s16  }
  0x4e   : > { %p7203_p9 = scmp.ne.s32.totalorder %s7197_s24, 0 }
  0x4f   : > { %s378_s26 = sand.u32 (!%p7203_p9), 1, %s5962_s14   ;;  %p7204_p13 = scmp.ne.s32.totalorder (!%p7203_p9), %s7196_s23, 0 }
  0x50   : > { %376 = sbr.rel (%p7203_p9) target bundleno = 3632 (0xe30), region = 60  ;;  %s4644_s12 = sshll.u32 (!%p7203_p9), %s378_s26, 7 }
  0x51   : > { %s379_s13 = scalar_lea.sflag (!%p7203_p9), [#allocation4], %s378_s26  ;;  %s6163_s19 = scalar_lea.vmem (!%p7203_p9), [#allocation3], %s4644_s12 }
  0x57   : > { %5949 = dma.done.wait (%p7204_p13), %s379_s13, 2048  }
  0x58   : > { %5951 = vsyncadd (%p7204_p13), %s379_s13, 4294965248  ;;  %p7205_p2 = scmp.eq.s32.totalorder %s6059_s17, 0 }
  0x5a   : > { %5953 = dma.done.wait (%p7205_p2), [#allocation6], 64   ;;  %p7206_p8 = pmov %p7205_p2 }
  0x5b   : > { %p438_p3 = scmp.lt.s32.totalorder %s6059_s17, 1  ;;  %p7207_p6 = scmp.ne.s32.totalorder %s6059_s17, 0 }
  0x5c   : > { %5955 = vsyncadd (%p7206_p8), [#allocation6], 4294967232  ;;  %v5506_v0 = vld [vmem:[%s7178_s1 + $0x40] sm:$0xff] (!%p7207_p6)   ;;  %v5510_v4 = vld [vmem:[%s7178_s1 + $0x48] sm:$0xff] (!%p7207_p6)   ;;  %v876_v29 = vlaneseq (!%p7207_p6)  ;;  %v5976_v35 = vmov (!%p7207_p6), 1983009808  }
  0x5d   : > { %s439_s24 = scalar_select %p438_p3, %s6059_s17, 1 }
  0x5e   : > { %462 = sbr.rel (%p7207_p6) target bundleno = 515 (0x203), region = 72  ;;  %v5507_v1 = vld [vmem:[%s7178_s1 + $0xc0] sm:$0xff] (!%p7207_p6)   ;;  %4942 = vmatprep.subr.bf16.mxu0 (!%p7207_p6), %v5506_v0  ;;  %v5511_v5 = vld [vmem:[%s7178_s1 + $0xc8] sm:$0xff] (!%p7207_p6)   ;;  %v5514_v8 = vld [vmem:[%s7178_s1 + $0x50] sm:$0xff] (!%p7207_p6)   ;;  %v877_v33 = vshrl.u32 (!%p7207_p6), %v876_v29, 7  ;;  %v874_v36 = vunpack.c.l.s4 (!%p7207_p6), %v5976_v35  ;;  %vm2641_vm0 = vcmask (!%p7207_p6), 1040384  }
  0x5f   : > { %s5443_s29 = smul.u32 192, %s439_s24  ;;  %s4940_s25 = sshll.u32 %s439_s24, 6  ;;  %v5508_v2 = vld [vmem:[%s7178_s1] sm:$0xff] (!%p7207_p6)   ;;  %4964 = vmatprep.subr.bf16.mxu1 (!%p7207_p6), %v5507_v1  ;;  %v5512_v6 = vld [vmem:[%s7178_s1 + $0x8] sm:$0xff] (!%p7207_p6)   ;;  %v5515_v9 = vld [vmem:[%s7178_s1 + $0xd0] sm:$0xff] (!%p7207_p6)   ;;  %vm2644_vm1 = vcmask (!%p7207_p6), 1044480  }
  0x60   : > { %s6178_s27 = scalar_lea.vmem %s7181_s4, %s4940_s25  ;;  %s4941_s30 = sshll.u32 %s439_s24, 7  ;;  %v5509_v3 = vld [vmem:[%s7178_s1 + $0x80] sm:$0xff] (!%p7207_p6)   ;;  %4943 = vmatpush3.bf16.msra.mxu0 (!%p7207_p6), %v5508_v2  ;;  %v5513_v7 = vld [vmem:[%s7178_s1 + $0x88] sm:$0xff] (!%p7207_p6)   ;;  %v5516_v10 = vld [vmem:[%s7178_s1 + $0x10] sm:$0xff] (!%p7207_p6)   ;;  %v875_v39 = vunpack.c.0.s8 (!%p7207_p6), %v874_v36 }
  0x61   : > { %s6183_s21 = scalar_lea.vmem %s7180_s3, %s5443_s29  ;;  %s6188_s26 = scalar_lea.vmem %s7182_s5, %s4941_s30  ;;  %4965 = vmatpush3.bf16.msra.mxu1 (!%p7207_p6), %v5509_v3  ;;  %4944 = vmatprep.subr.bf16.mxu0 (!%p7207_p6), %v5510_v4  ;;  %v5517_v11 = vld [vmem:[%s7178_s1 + $0x90] sm:$0xff] (!%p7207_p6)   ;;  %v5518_v12 = vld [vmem:[%s7178_s1 + $0x58] sm:$0xff] (!%p7207_p6)   ;;  %v5522_v16 = vld [vmem:[%s7178_s1 + $0x60] sm:$0xff] (!%p7207_p6)  }
  0x62   : > { %s5444_s12 = smul.u32 24, %s439_s24  ;;  %4966 = vmatprep.subr.bf16.mxu1 (!%p7207_p6), %v5511_v5  ;;  %v5519_v13 = vld [vmem:[%s7178_s1 + $0xd8] sm:$0xff] (!%p7207_p6)   ;;  %v5523_v17 = vld [vmem:[%s7178_s1 + $0xe0] sm:$0xff] (!%p7207_p6)   ;;  %v5526_v20 = vld [vmem:[%s7178_s1 + $0x68] sm:$0xff] (!%p7207_p6)   ;;  %v6305_v41 = vsub.s32 (!%p7207_p6), %v875_v39, %v877_v33 }
  0x63   : > { %v5520_v14 = vld [vmem:[%s7178_s1 + $0x18] sm:$0xff] (!%p7207_p6)   ;;  %v5524_v18 = vld [vmem:[%s7178_s1 + $0x20] sm:$0xff] (!%p7207_p6)   ;;  %v5527_v21 = vld [vmem:[%s7178_s1 + $0xe8] sm:$0xff] (!%p7207_p6)  }
  0x64   : > { %s6193_s8 = scalar_lea.vmem %s7184_s7, %s5444_s12  ;;  %4945 = vmatpush3.bf16.msra.mxu0 (!%p7207_p6), %v5512_v6  ;;  %v5521_v15 = vld [vmem:[%s7178_s1 + $0x98] sm:$0xff] (!%p7207_p6)   ;;  %v5525_v19 = vld [vmem:[%s7178_s1 + $0xa0] sm:$0xff] (!%p7207_p6)   ;;  %v5528_v22 = vld [vmem:[%s7178_s1 + $0x28] sm:$0xff] (!%p7207_p6)  }
  0x65   : > { %4967 = vmatpush3.bf16.msra.mxu1 %v5513_v7  ;;  %4946 = vmatprep.subr.bf16.mxu0 %v5514_v8  ;;  %v5529_v23 = vld [vmem:[%s7178_s1 + $0xa8] sm:$0xff]   ;;  %v5530_v24 = vld [vmem:[%s7178_s1 + $0x70] sm:$0xff]   ;;  %v5534_v28 = vld [vmem:[%s7178_s1 + $0x78] sm:$0xff]  }
  0x66   : > { %4968 = vmatprep.subr.bf16.mxu1 %v5515_v9  ;;  %v5531_v25 = vld [vmem:[%s7178_s1 + $0xf0] sm:$0xff]   ;;  %v5535_v30 = vld [vmem:[%s7178_s1 + $0xf8] sm:$0xff]   ;;  %v5541_v38 = vld [vmem:[%s7178_s1 + $0x140] sm:$0xff]  }
  0x67   : > { %v5532_v26 = vld [vmem:[%s7178_s1 + $0x30] sm:$0xff]   ;;  %v5536_v31 = vld [vmem:[%s7178_s1 + $0x38] sm:$0xff]   ;;  %v5542_v40 = vld [vmem:[%s7178_s1 + $0x1c0] sm:$0xff]  }
  0x68   : > { %4947 = vmatpush3.bf16.msra.mxu0 %v5516_v10  ;;  %v5533_v27 = vld [vmem:[%s7178_s1 + $0xb0] sm:$0xff]   ;;  %v5537_v32 = vld [vmem:[%s7178_s1 + $0xb8] sm:$0xff]   ;;  %v5543_v44 = vld [vmem:[%s7178_s1 + $0x100] sm:$0xff]  }
  0x69   : > { %4969 = vmatpush3.bf16.msra.mxu1 %v5517_v11  ;;  %4948 = vmatprep.subr.bf16.mxu0 %v5518_v12  ;;  %v5538_v34 = vld [vmem:[%s7177_s0] ss:$48 sps:$4 sm:$0xff]   ;;  %v5540_v37 = vld [vmem:[%s7177_s0 + $0x4] ss:$48 sps:$4 sm:$0xff]   ;;  %v5545_v48 = vld [vmem:[%s7178_s1 + $0x148] sm:$0xff]  }
  0x6a   : > { %4970 = vmatprep.subr.bf16.mxu1 %v5519_v13  ;;  %v879_v42 = vrot.slane %v5538_v34, %v6305_v41  ;;  %v886_v43 = vrot.slane %v5540_v37, %v6305_v41  ;;  %v5544_v45 = vld [vmem:[%s7178_s1 + $0x180] sm:$0xff]   ;;  %v5546_v49 = vld [vmem:[%s7178_s1 + $0x1c8] sm:$0xff]   ;;  %v5549_v52 = vld [vmem:[%s7178_s1 + $0x150] sm:$0xff]  }
  0x6b   : > { %v5547_v50 = vld [vmem:[%s7178_s1 + $0x108] sm:$0xff]   ;;  %v5550_v53 = vld [vmem:[%s7178_s1 + $0x1d0] sm:$0xff]   ;;  %v5553_v56 = vld [vmem:[%s7178_s1 + $0x158] sm:$0xff]  }
  0x6c   : > { %4949 = vmatpush3.bf16.msra.mxu0 %v5520_v14  ;;  %v887_v46 = vcombine.high %v879_v42, %v879_v42  ;;  %v888_v47 = vcombine.high %v886_v43, %v886_v43  ;;  %v5548_v51 = vld [vmem:[%s7178_s1 + $0x188] sm:$0xff]   ;;  %v5551_v54 = vld [vmem:[%s7178_s1 + $0x110] sm:$0xff]   ;;  %v5554_v57 = vld [vmem:[%s7178_s1 + $0x1d8] sm:$0xff]  }
  0x6d   : > { %4971 = vmatpush3.bf16.msra.mxu1 %v5521_v15  ;;  %4950 = vmatprep.subr.bf16.mxu0 %v5522_v16  ;;  %v5552_v55 = vld [vmem:[%s7178_s1 + $0x190] sm:$0xff]   ;;  %v5555_v58 = vld [vmem:[%s7178_s1 + $0x118] sm:$0xff]   ;;  %v5557_v60 = vld [vmem:[%s7178_s1 + $0x160] sm:$0xff]  }
  0x6e   : > { %4972 = vmatprep.subr.bf16.mxu1 %v5523_v17  ;;  %2187 = vmatprep.mubr.bf16.mxu0 %v887_v46  ;;  %v5556_v59 = vld [vmem:[%s7178_s1 + $0x198] sm:$0xff]   ;;  %v5558_v61 = vld [vmem:[%s7178_s1 + $0x1e0] sm:$0xff]   ;;  %v5561_v0 = vld [vmem:[%s7178_s1 + $0x168] sm:$0xff]  }
  0x6f   : > { %2227 = vmatprep.mubr.bf16.mxu1 %v888_v47  ;;  %v5559_v62 = vld [vmem:[%s7178_s1 + $0x120] sm:$0xff]   ;;  %v5562_v1 = vld [vmem:[%s7178_s1 + $0x1e8] sm:$0xff]   ;;  %v5565_v4 = vld [vmem:[%s7178_s1 + $0x170] sm:$0xff]  }
  0x70   : > { %4951 = vmatpush3.bf16.msra.mxu0 %v5524_v18  ;;  %v5560_v63 = vld [vmem:[%s7178_s1 + $0x1a0] sm:$0xff]   ;;  %v5563_v2 = vld [vmem:[%s7178_s1 + $0x128] sm:$0xff]   ;;  %v5566_v5 = vld [vmem:[%s7178_s1 + $0x1f0] sm:$0xff]  }
  0x71   : > { %4973 = vmatpush3.bf16.msra.mxu1 %v5525_v19  ;;  %4952 = vmatprep.subr.bf16.mxu0 %v5526_v20  ;;  %v5564_v3 = vld [vmem:[%s7178_s1 + $0x1a8] sm:$0xff]   ;;  %v5567_v6 = vld [vmem:[%s7178_s1 + $0x130] sm:$0xff]   ;;  %v5569_v8 = vld [vmem:[%s7178_s1 + $0x178] sm:$0xff]  }
  0x72   : > { %4974 = vmatprep.subr.bf16.mxu1 %v5527_v21  ;;  %v5568_v7 = vld [vmem:[%s7178_s1 + $0x1b0] sm:$0xff]   ;;  %v5570_v9 = vld [vmem:[%s7178_s1 + $0x1f8] sm:$0xff]   ;;  %v5576_v16 = vld [vmem:[%s7178_s1 + $0x240] sm:$0xff]  }
  0x73   : > { %v5573_v10 = vld [vmem:[%s7177_s0 + $0x8] ss:$48 sps:$4 sm:$0xff]   ;;  %v5575_v11 = vld [vmem:[%s7177_s0 + $0xc] ss:$48 sps:$4 sm:$0xff]   ;;  %v5577_v19 = vld [vmem:[%s7178_s1 + $0x2c0] sm:$0xff]  }
  0x74   : > { %4953 = vmatpush3.bf16.msra.mxu0 %v5528_v22  ;;  %v5571_v12 = vld [vmem:[%s7178_s1 + $0x138] sm:$0xff]   ;;  %v897_v14 = vrot.slane %v5573_v10, %v6305_v41  ;;  %v904_v15 = vrot.slane %v5575_v11, %v6305_v41  ;;  %v5578_v20 = vld [vmem:[%s7178_s1 + $0x200] sm:$0xff]   ;;  %v5580_v22 = vld [vmem:[%s7178_s1 + $0x248] sm:$0xff]  }
  0x75   : > { %4975 = vmatpush3.bf16.msra.mxu1 %v5529_v23  ;;  %4954 = vmatprep.subr.bf16.mxu0 %v5530_v24  ;;  %v5572_v13 = vld [vmem:[%s7178_s1 + $0x1b8] sm:$0xff]   ;;  %v5579_v21 = vld [vmem:[%s7178_s1 + $0x280] sm:$0xff]   ;;  %v5581_v23 = vld [vmem:[%s7178_s1 + $0x2c8] sm:$0xff]  }
  0x76   : > { %4976 = vmatprep.subr.bf16.mxu1 %v5531_v25  ;;  %v905_v17 = vcombine.high %v897_v14, %v897_v14  ;;  %v906_v18 = vcombine.high %v904_v15, %v904_v15  ;;  %v5582_v24 = vld [vmem:[%s7178_s1 + $0x208] sm:$0xff]   ;;  %v5587_v29 = vld [vmem:[%s7178_s1 + $0x290] sm:$0xff]   ;;  %v5591_v33 = vld [vmem:[%s7178_s1 + $0x298] sm:$0xff]  }
  0x77   : > { %v5583_v25 = vld [vmem:[%s7178_s1 + $0x288] sm:$0xff]   ;;  %v5592_v34 = vld [vmem:[%s7178_s1 + $0x260] sm:$0xff]   ;;  %v5603_v46 = vld [vmem:[%s7178_s1 + $0x2b0] sm:$0xff]  }
  0x78   : > { %4955 = vmatpush3.bf16.msra.mxu0 %v5532_v26  ;;  %v5584_v26 = vld [vmem:[%s7178_s1 + $0x250] sm:$0xff]   ;;  %v5593_v35 = vld [vmem:[%s7178_s1 + $0x2e0] sm:$0xff]   ;;  %v5597_v39 = vld [vmem:[%s7178_s1 + $0x2e8] sm:$0xff]  }
  0x79   : > { %4977 = vmatpush3.bf16.msra.mxu1 %v5533_v27  ;;  %4956 = vmatprep.subr.bf16.mxu0 %v5534_v28  ;;  %v5585_v27 = vld [vmem:[%s7178_s1 + $0x2d0] sm:$0xff]   ;;  %v5594_v36 = vld [vmem:[%s7178_s1 + $0x220] sm:$0xff]   ;;  %v5604_v47 = vld [vmem:[%s7178_s1 + $0x278] sm:$0xff]  }
  0x7a   : > { %4978 = vmatprep.subr.bf16.mxu1 %v5535_v30  ;;  %v5586_v28 = vld [vmem:[%s7178_s1 + $0x210] sm:$0xff]   ;;  %v5588_v30 = vld [vmem:[%s7178_s1 + $0x258] sm:$0xff]   ;;  %v5595_v37 = vld [vmem:[%s7178_s1 + $0x2a0] sm:$0xff]  }
  0x7b   : > { %v5628_v10 = vld [vmem:[%s7178_s1 + $0x3e0] sm:$0xff]  }
  0x7c   : > { %4957 = vmatpush3.bf16.msra.mxu0 %v5536_v31  ;;  %v5589_v31 = vld [vmem:[%s7178_s1 + $0x2d8] sm:$0xff]   ;;  %v5629_v11 = vld [vmem:[%s7178_s1 + $0x320] sm:$0xff]  }
  0x7d   : > { %4979 = vmatpush3.bf16.msra.mxu1 %v5537_v32  ;;  %4986 = vmatprep.subr.bf16.mxu0 %v5541_v38  ;;  %v5590_v32 = vld [vmem:[%s7178_s1 + $0x218] sm:$0xff]   ;;  %v5596_v38 = vld [vmem:[%s7178_s1 + $0x268] sm:$0xff]  }
  0x7e   : > { %5008 = vmatprep.subr.bf16.mxu1 %v5542_v40  ;;  %v5598_v40 = vld [vmem:[%s7178_s1 + $0x228] sm:$0xff]  }
  0x7f   : > { %2188 = vmatmul.mubr.bf16.vlgmr.msra.gmra.mrb[0].mxu0 %v879_v42  ;;  %v5599_v42 = vld [vmem:[%s7178_s1 + $0x2a8] sm:$0xff]  }
  0x80   : > { %2228 = vmatmul.mubr.bf16.vlgmr.msra.gmra.mrb[0].mxu1 %v886_v43  ;;  %4987 = vmatpush3.bf16.msra.mxu0 %v5543_v44  ;;  %v5600_v43 = vld [vmem:[%s7178_s1 + $0x270] sm:$0xff]  }
  0x81   : > { %5009 = vmatpush3.bf16.msra.mxu1 %v5544_v45  ;;  %4988 = vmatprep.subr.bf16.mxu0 %v5545_v48  ;;  %v5601_v44 = vld [vmem:[%s7178_s1 + $0x2f0] sm:$0xff]   ;;  %v5605_v48 = vld [vmem:[%s7178_s1 + $0x2f8] sm:$0xff]  }
  0x82   : > { %5010 = vmatprep.subr.bf16.mxu1 %v5546_v49  ;;  %2267 = vmatprep.mubr.bf16.mxu0 %v905_v17  ;;  %v5602_v45 = vld [vmem:[%s7178_s1 + $0x230] sm:$0xff]   ;;  %v5606_v49 = vld [vmem:[%s7178_s1 + $0x238] sm:$0xff]  }
  0x83   : > { %2307 = vmatprep.mubr.bf16.mxu1 %v906_v18  ;;  %v5635_v17 = vld [vmem:[%s7178_s1 + $0x370] sm:$0xff]  }
  0x84   : > { %4989 = vmatpush3.bf16.msra.mxu0 %v5547_v50  ;;  %v5608_v50 = vld [vmem:[%s7177_s0 + $0x10] ss:$48 sps:$4 sm:$0xff]  }
  0x85   : > { %5011 = vmatpush3.bf16.msra.mxu1 %v5548_v51  ;;  %4990 = vmatprep.subr.bf16.mxu0 %v5549_v52  ;;  %v5610_v51 = vld [vmem:[%s7177_s0 + $0x14] ss:$48 sps:$4 sm:$0xff]   ;;  %v5607_v52 = vld [vmem:[%s7178_s1 + $0x2b8] sm:$0xff]  }
  0x86   : > { %5012 = vmatprep.subr.bf16.mxu1 %v5550_v53  ;;  %v915_v53 = vrot.slane %v5608_v50, %v6305_v41  ;;  %v5636_v18 = vld [vmem:[%s7178_s1 + $0x3f0] sm:$0xff]   ;;  %v5664_v50 = vld [vmem:[%s7178_s1 + $0x420] sm:$0xff]  }
  0x88   : > { %4991 = vmatpush3.bf16.msra.mxu0 %v5551_v54  ;;  %v922_v54 = vrot.slane %v5610_v51, %v6305_v41  ;;  %v5665_v51 = vld [vmem:[%s7178_s1 + $0x4a0] sm:$0xff]  }
  0x89   : > { %5013 = vmatpush3.bf16.msra.mxu1 %v5552_v55  ;;  %4992 = vmatprep.subr.bf16.mxu0 %v5553_v56  ;;  %v5611_v55 = vld [vmem:[%s7178_s1 + $0x340] sm:$0xff]  }
  0x8a   : > { %5014 = vmatprep.subr.bf16.mxu1 %v5554_v57  ;;  %v5612_v56 = vld [vmem:[%s7178_s1 + $0x3c0] sm:$0xff]   ;;  %v923_v57 = vcombine.high %v915_v53, %v915_v53 }
  0x8c   : > { %4993 = vmatpush3.bf16.msra.mxu0 %v5555_v58  ;;  %v924_v58 = vcombine.high %v922_v54, %v922_v54 }
  0x8d   : > { %5015 = vmatpush3.bf16.msra.mxu1 %v5556_v59  ;;  %4994 = vmatprep.subr.bf16.mxu0 %v5557_v60  ;;  %v5613_v59 = vld [vmem:[%s7178_s1 + $0x300] sm:$0xff]  }
  0x8e   : > { %5016 = vmatprep.subr.bf16.mxu1 %v5558_v61  ;;  %v5614_v60 = vld [vmem:[%s7178_s1 + $0x380] sm:$0xff]   ;;  %v5615_v61 = vld [vmem:[%s7178_s1 + $0x348] sm:$0xff]  }
  0x90   : > { %4995 = vmatpush3.bf16.msra.mxu0 %v5559_v62  ;;  %v5616_v62 = vld [vmem:[%s7178_s1 + $0x3c8] sm:$0xff]  }
  0x91   : > { %5017 = vmatpush3.bf16.msra.mxu1 %v5560_v63  ;;  %4996 = vmatprep.subr.bf16.mxu0 %v5561_v0  ;;  %v5617_v63 = vld [vmem:[%s7178_s1 + $0x308] sm:$0xff]  }
  0x92   : > { %5018 = vmatprep.subr.bf16.mxu1 %v5562_v1  ;;  %v5618_v0 = vld [vmem:[%s7178_s1 + $0x388] sm:$0xff]   ;;  %v5619_v1 = vld [vmem:[%s7178_s1 + $0x350] sm:$0xff]  }
  0x94   : > { %4997 = vmatpush3.bf16.msra.mxu0 %v5563_v2  ;;  %v5620_v2 = vld [vmem:[%s7178_s1 + $0x3d0] sm:$0xff]  }
  0x95   : > { %5019 = vmatpush3.bf16.msra.mxu1 %v5564_v3  ;;  %4998 = vmatprep.subr.bf16.mxu0 %v5565_v4  ;;  %v5621_v3 = vld [vmem:[%s7178_s1 + $0x310] sm:$0xff]  }
  0x96   : > { %5020 = vmatprep.subr.bf16.mxu1 %v5566_v5  ;;  %v5622_v4 = vld [vmem:[%s7178_s1 + $0x390] sm:$0xff]   ;;  %v5623_v5 = vld [vmem:[%s7178_s1 + $0x358] sm:$0xff]  }
  0x98   : > { %4999 = vmatpush3.bf16.msra.mxu0 %v5567_v6  ;;  %v5624_v6 = vld [vmem:[%s7178_s1 + $0x3d8] sm:$0xff]  }
  0x99   : > { %5021 = vmatpush3.bf16.msra.mxu1 %v5568_v7  ;;  %5000 = vmatprep.subr.bf16.mxu0 %v5569_v8  ;;  %v5625_v7 = vld [vmem:[%s7178_s1 + $0x318] sm:$0xff]  }
  0x9a   : > { %5022 = vmatprep.subr.bf16.mxu1 %v5570_v9  ;;  %v5626_v8 = vld [vmem:[%s7178_s1 + $0x398] sm:$0xff]   ;;  %v5627_v9 = vld [vmem:[%s7178_s1 + $0x360] sm:$0xff]  }
  0x9c   : > { %5001 = vmatpush3.bf16.msra.mxu0 %v5571_v12  ;;  %v5630_v12 = vld [vmem:[%s7178_s1 + $0x3a0] sm:$0xff]  }
  0x9d   : > { %5023 = vmatpush3.bf16.msra.mxu1 %v5572_v13  ;;  %5030 = vmatprep.subr.bf16.mxu0 %v5576_v16  ;;  %v5631_v13 = vld [vmem:[%s7178_s1 + $0x368] sm:$0xff]  }
  0x9e   : > { %5052 = vmatprep.subr.bf16.mxu1 %v5577_v19  ;;  %v5634_v16 = vld [vmem:[%s7178_s1 + $0x3a8] sm:$0xff]   ;;  %v5637_v19 = vld [vmem:[%s7178_s1 + $0x330] sm:$0xff]  }
  0x9f   : > { %2268 = vmatmul.mubr.bf16.vlgmr.msra.gmra.mrb[4].mxu0 %v897_v14  ;;  %v5632_v14 = vld [vmem:[%s7178_s1 + $0x3e8] sm:$0xff]  }
  0xa0   : > { %2308 = vmatmul.mubr.bf16.vlgmr.msra.gmra.mrb[4].mxu1 %v904_v15  ;;  %5031 = vmatpush3.bf16.msra.mxu0 %v5578_v20  ;;  %v5633_v15 = vld [vmem:[%s7178_s1 + $0x328] sm:$0xff]   ;;  %v5638_v20 = vld [vmem:[%s7178_s1 + $0x3b0] sm:$0xff]  }
  0xa1   : > { %5053 = vmatpush3.bf16.msra.mxu1 %v5579_v21  ;;  %5032 = vmatprep.subr.bf16.mxu0 %v5580_v22  ;;  %v5639_v21 = vld [vmem:[%s7178_s1 + $0x378] sm:$0xff]  }
  0xa2   : > { %5054 = vmatprep.subr.bf16.mxu1 %v5581_v23  ;;  %2347 = vmatprep.mubr.bf16.mxu0 %v923_v57  ;;  %v5640_v22 = vld [vmem:[%s7178_s1 + $0x3f8] sm:$0xff]   ;;  %v5671_v57 = vld [vmem:[%s7178_s1 + $0x4f0] sm:$0xff]  }
  0xa3   : > { %2387 = vmatprep.mubr.bf16.mxu1 %v924_v58  ;;  %v5641_v23 = vld [vmem:[%s7178_s1 + $0x338] sm:$0xff]   ;;  %v5672_v58 = vld [vmem:[%s7178_s1 + $0x430] sm:$0xff]  }
  0xa4   : > { %5033 = vmatpush3.bf16.msra.mxu0 %v5582_v24  ;;  %v5642_v24 = vld [vmem:[%s7178_s1 + $0x3b8] sm:$0xff]  }
  0xa5   : > { %5055 = vmatpush3.bf16.msra.mxu1 %v5583_v25  ;;  %5034 = vmatprep.subr.bf16.mxu0 %v5584_v26  ;;  %v5643_v25 = vld [vmem:[%s7177_s0 + $0x18] ss:$48 sps:$4 sm:$0xff]   ;;  %v5645_v26 = vld [vmem:[%s7177_s0 + $0x1c] ss:$48 sps:$4 sm:$0xff]  }
  0xa6   : > { %5056 = vmatprep.subr.bf16.mxu1 %v5585_v27  ;;  %v933_v27 = vrot.slane %v5643_v25, %v6305_v41  ;;  %v5700_v25 = vld [vmem:[%s7178_s1 + $0x5a0] sm:$0xff]  }
  0xa8   : > { %5035 = vmatpush3.bf16.msra.mxu0 %v5586_v28  ;;  %v5646_v28 = vld [vmem:[%s7178_s1 + $0x440] sm:$0xff]  }
  0xa9   : > { %5057 = vmatpush3.bf16.msra.mxu1 %v5587_v29  ;;  %5036 = vmatprep.subr.bf16.mxu0 %v5588_v30  ;;  %v940_v29 = vrot.slane %v5645_v26, %v6305_v41  ;;  %v5647_v30 = vld [vmem:[%s7178_s1 + $0x4c0] sm:$0xff]   ;;  %v5701_v26 = vld [vmem:[%s7178_s1 + $0x568] sm:$0xff]  }
  0xaa   : > { %5058 = vmatprep.subr.bf16.mxu1 %v5589_v31  ;;  %v941_v31 = vcombine.high %v933_v27, %v933_v27 }
  0xac   : > { %5037 = vmatpush3.bf16.msra.mxu0 %v5590_v32  ;;  %v5648_v32 = vld [vmem:[%s7178_s1 + $0x400] sm:$0xff]  }
  0xad   : > { %5059 = vmatpush3.bf16.msra.mxu1 %v5591_v33  ;;  %5038 = vmatprep.subr.bf16.mxu0 %v5592_v34  ;;  %v942_v33 = vcombine.high %v940_v29, %v940_v29  ;;  %v5649_v34 = vld [vmem:[%s7178_s1 + $0x480] sm:$0xff]  }
  0xae   : > { %5060 = vmatprep.subr.bf16.mxu1 %v5593_v35  ;;  %v5650_v35 = vld [vmem:[%s7178_s1 + $0x448] sm:$0xff]  }
  0xb0   : > { %5039 = vmatpush3.bf16.msra.mxu0 %v5594_v36  ;;  %v5651_v36 = vld [vmem:[%s7178_s1 + $0x4c8] sm:$0xff]  }
  0xb1   : > { %5061 = vmatpush3.bf16.msra.mxu1 %v5595_v37  ;;  %5040 = vmatprep.subr.bf16.mxu0 %v5596_v38  ;;  %v5652_v37 = vld [vmem:[%s7178_s1 + $0x408] sm:$0xff]  }
  0xb2   : > { %5062 = vmatprep.subr.bf16.mxu1 %v5597_v39  ;;  %v5653_v38 = vld [vmem:[%s7178_s1 + $0x488] sm:$0xff]   ;;  %v5654_v39 = vld [vmem:[%s7178_s1 + $0x450] sm:$0xff]  }
  0xb4   : > { %5041 = vmatpush3.bf16.msra.mxu0 %v5598_v40  ;;  %v5655_v40 = vld [vmem:[%s7178_s1 + $0x4d0] sm:$0xff]  }
  0xb5   : > { %5063 = vmatpush3.bf16.msra.mxu1 %v5599_v42  ;;  %5042 = vmatprep.subr.bf16.mxu0 %v5600_v43  ;;  %v5656_v42 = vld [vmem:[%s7178_s1 + $0x410] sm:$0xff]  }
  0xb6   : > { %5064 = vmatprep.subr.bf16.mxu1 %v5601_v44  ;;  %v5657_v43 = vld [vmem:[%s7178_s1 + $0x490] sm:$0xff]   ;;  %v5658_v44 = vld [vmem:[%s7178_s1 + $0x458] sm:$0xff]  }
  0xb8   : > { %5043 = vmatpush3.bf16.msra.mxu0 %v5602_v45  ;;  %v5659_v45 = vld [vmem:[%s7178_s1 + $0x4d8] sm:$0xff]  }
  0xb9   : > { %5065 = vmatpush3.bf16.msra.mxu1 %v5603_v46  ;;  %5044 = vmatprep.subr.bf16.mxu0 %v5604_v47  ;;  %v5660_v46 = vld [vmem:[%s7178_s1 + $0x418] sm:$0xff]  }
  0xba   : > { %5066 = vmatprep.subr.bf16.mxu1 %v5605_v48  ;;  %v5661_v47 = vld [vmem:[%s7178_s1 + $0x498] sm:$0xff]   ;;  %v5662_v48 = vld [vmem:[%s7178_s1 + $0x460] sm:$0xff]  }
  0xbc   : > { %5045 = vmatpush3.bf16.msra.mxu0 %v5606_v49  ;;  %v5663_v49 = vld [vmem:[%s7178_s1 + $0x4e0] sm:$0xff]  }
  0xbd   : > { %5067 = vmatpush3.bf16.msra.mxu1 %v5607_v52  ;;  %5074 = vmatprep.subr.bf16.mxu0 %v5611_v55  ;;  %v5666_v52 = vld [vmem:[%s7178_s1 + $0x468] sm:$0xff]  }
  0xbe   : > { %5096 = vmatprep.subr.bf16.mxu1 %v5612_v56  ;;  %v5669_v55 = vld [vmem:[%s7178_s1 + $0x4a8] sm:$0xff]   ;;  %v5670_v56 = vld [vmem:[%s7178_s1 + $0x470] sm:$0xff]  }
  0xbf   : > { %2348 = vmatmul.mubr.bf16.vlgmr.msra.gmra.mrb[8].mxu0 %v915_v53  ;;  %v5667_v53 = vld [vmem:[%s7178_s1 + $0x4e8] sm:$0xff]  }
  0xc0   : > { %2388 = vmatmul.mubr.bf16.vlgmr.msra.gmra.mrb[8].mxu1 %v922_v54  ;;  %5075 = vmatpush3.bf16.msra.mxu0 %v5613_v59  ;;  %v5668_v54 = vld [vmem:[%s7178_s1 + $0x428] sm:$0xff]   ;;  %v5673_v59 = vld [vmem:[%s7178_s1 + $0x4b0] sm:$0xff]  }
  0xc1   : > { %5097 = vmatpush3.bf16.msra.mxu1 %v5614_v60  ;;  %5076 = vmatprep.subr.bf16.mxu0 %v5615_v61  ;;  %v5674_v60 = vld [vmem:[%s7178_s1 + $0x478] sm:$0xff]  }
  0xc2   : > { %5098 = vmatprep.subr.bf16.mxu1 %v5616_v62  ;;  %2427 = vmatprep.mubr.bf16.mxu0 %v941_v31  ;;  %v5675_v61 = vld [vmem:[%s7178_s1 + $0x4f8] sm:$0xff]   ;;  %v5706_v31 = vld [vmem:[%s7178_s1 + $0x5f0] sm:$0xff]  }
  0xc3   : > { %2467 = vmatprep.mubr.bf16.mxu1 %v942_v33  ;;  %v5676_v62 = vld [vmem:[%s7178_s1 + $0x438] sm:$0xff]   ;;  %v5708_v33 = vld [vmem:[%s7178_s1 + $0x5b0] sm:$0xff]  }
  0xc4   : > { %5077 = vmatpush3.bf16.msra.mxu0 %v5617_v63  ;;  %v5677_v63 = vld [vmem:[%s7178_s1 + $0x4b8] sm:$0xff]  }
  0xc5   : > { %5099 = vmatpush3.bf16.msra.mxu1 %v5618_v0  ;;  %5078 = vmatprep.subr.bf16.mxu0 %v5619_v1  ;;  %v5678_v0 = vld [vmem:[%s7177_s0 + $0x20] ss:$48 sps:$4 sm:$0xff]   ;;  %v5680_v1 = vld [vmem:[%s7177_s0 + $0x24] ss:$48 sps:$4 sm:$0xff]  }
  0xc6   : > { %5100 = vmatprep.subr.bf16.mxu1 %v5620_v2  ;;  %v5681_v2 = vld [vmem:[%s7178_s1 + $0x540] sm:$0xff]  }
  0xc8   : > { %5079 = vmatpush3.bf16.msra.mxu0 %v5621_v3  ;;  %v951_v3 = vrot.slane %v5678_v0, %v6305_v41 }
  0xc9   : > { %5101 = vmatpush3.bf16.msra.mxu1 %v5622_v4  ;;  %5080 = vmatprep.subr.bf16.mxu0 %v5623_v5  ;;  %v958_v4 = vrot.slane %v5680_v1, %v6305_v41  ;;  %v5682_v5 = vld [vmem:[%s7178_s1 + $0x5c0] sm:$0xff]  }
  0xca   : > { %5102 = vmatprep.subr.bf16.mxu1 %v5624_v6  ;;  %v5683_v6 = vld [vmem:[%s7178_s1 + $0x500] sm:$0xff]  }
  0xcc   : > { %5081 = vmatpush3.bf16.msra.mxu0 %v5625_v7  ;;  %v959_v7 = vcombine.high %v951_v3, %v951_v3 }
  0xcd   : > { %5103 = vmatpush3.bf16.msra.mxu1 %v5626_v8  ;;  %5082 = vmatprep.subr.bf16.mxu0 %v5627_v9  ;;  %v960_v8 = vcombine.high %v958_v4, %v958_v4  ;;  %v5684_v9 = vld [vmem:[%s7178_s1 + $0x580] sm:$0xff]  }
  0xce   : > { %5104 = vmatprep.subr.bf16.mxu1 %v5628_v10  ;;  %v5685_v10 = vld [vmem:[%s7178_s1 + $0x548] sm:$0xff]  }
  0xd0   : > { %5083 = vmatpush3.bf16.msra.mxu0 %v5629_v11  ;;  %v5686_v11 = vld [vmem:[%s7178_s1 + $0x5c8] sm:$0xff]  }
  0xd1   : > { %5105 = vmatpush3.bf16.msra.mxu1 %v5630_v12  ;;  %5084 = vmatprep.subr.bf16.mxu0 %v5631_v13  ;;  %v5687_v12 = vld [vmem:[%s7178_s1 + $0x508] sm:$0xff]  }
  0xd2   : > { %5106 = vmatprep.subr.bf16.mxu1 %v5632_v14  ;;  %v5688_v13 = vld [vmem:[%s7178_s1 + $0x588] sm:$0xff]   ;;  %v5689_v14 = vld [vmem:[%s7178_s1 + $0x550] sm:$0xff]  }
  0xd4   : > { %5085 = vmatpush3.bf16.msra.mxu0 %v5633_v15  ;;  %v5690_v15 = vld [vmem:[%s7178_s1 + $0x5d0] sm:$0xff]  }
  0xd5   : > { %5107 = vmatpush3.bf16.msra.mxu1 %v5634_v16  ;;  %5086 = vmatprep.subr.bf16.mxu0 %v5635_v17  ;;  %v5691_v16 = vld [vmem:[%s7178_s1 + $0x510] sm:$0xff]  }
  0xd6   : > { %5108 = vmatprep.subr.bf16.mxu1 %v5636_v18  ;;  %v5692_v17 = vld [vmem:[%s7178_s1 + $0x590] sm:$0xff]   ;;  %v5693_v18 = vld [vmem:[%s7178_s1 + $0x558] sm:$0xff]  }
  0xd8   : > { %5087 = vmatpush3.bf16.msra.mxu0 %v5637_v19  ;;  %v5694_v19 = vld [vmem:[%s7178_s1 + $0x5d8] sm:$0xff]  }
  0xd9   : > { %5109 = vmatpush3.bf16.msra.mxu1 %v5638_v20  ;;  %5088 = vmatprep.subr.bf16.mxu0 %v5639_v21  ;;  %v5695_v20 = vld [vmem:[%s7178_s1 + $0x518] sm:$0xff]  }
  0xda   : > { %5110 = vmatprep.subr.bf16.mxu1 %v5640_v22  ;;  %v5696_v21 = vld [vmem:[%s7178_s1 + $0x598] sm:$0xff]   ;;  %v5697_v22 = vld [vmem:[%s7178_s1 + $0x560] sm:$0xff]  }
  0xdc   : > { %5089 = vmatpush3.bf16.msra.mxu0 %v5641_v23  ;;  %v5698_v23 = vld [vmem:[%s7178_s1 + $0x5e0] sm:$0xff]  }
  0xdd   : > { %5111 = vmatpush3.bf16.msra.mxu1 %v5642_v24  ;;  %5118 = vmatprep.subr.bf16.mxu0 %v5646_v28  ;;  %v5699_v24 = vld [vmem:[%s7178_s1 + $0x520] sm:$0xff]   ;;  %v5703_v28 = vld [vmem:[%s7178_s1 + $0x528] sm:$0xff]  }
  0xde   : > { %5140 = vmatprep.subr.bf16.mxu1 %v5647_v30  ;;  %v5705_v30 = vld [vmem:[%s7178_s1 + $0x570] sm:$0xff]  }
  0xdf   : > { %2428 = vmatmul.mubr.bf16.vlgmr.msra.gmra.mrb[12].mxu0 %v933_v27  ;;  %v5702_v27 = vld [vmem:[%s7178_s1 + $0x5e8] sm:$0xff]  }
  0xe0   : > { %2468 = vmatmul.mubr.bf16.vlgmr.msra.gmra.mrb[12].mxu1 %v940_v29  ;;  %5119 = vmatpush3.bf16.msra.mxu0 %v5648_v32  ;;  %v5704_v29 = vld [vmem:[%s7178_s1 + $0x5a8] sm:$0xff]   ;;  %v5707_v32 = vld [vmem:[%s7178_s1 + $0x530] sm:$0xff]  }
  0xe1   : > { %5141 = vmatpush3.bf16.msra.mxu1 %v5649_v34  ;;  %5120 = vmatprep.subr.bf16.mxu0 %v5650_v35  ;;  %v5709_v34 = vld [vmem:[%s7178_s1 + $0x578] sm:$0xff]  }
  0xe2   : > { %5142 = vmatprep.subr.bf16.mxu1 %v5651_v36  ;;  %2507 = vmatprep.mubr.bf16.mxu0 %v959_v7  ;;  %v5710_v35 = vld [vmem:[%s7178_s1 + $0x5f8] sm:$0xff]  }
  0xe3   : > { %2547 = vmatprep.mubr.bf16.mxu1 %v960_v8  ;;  %v5711_v36 = vld [vmem:[%s7178_s1 + $0x538] sm:$0xff]  }
  0xe4   : > { %5121 = vmatpush3.bf16.msra.mxu0 %v5652_v37  ;;  %v5712_v37 = vld [vmem:[%s7178_s1 + $0x5b8] sm:$0xff]  }
  0xe5   : > { %5143 = vmatpush3.bf16.msra.mxu1 %v5653_v38  ;;  %5122 = vmatprep.subr.bf16.mxu0 %v5654_v39  ;;  %v5713_v38 = vld [vmem:[%s7177_s0 + $0x28] ss:$48 sps:$4 sm:$0xff]   ;;  %v5715_v39 = vld [vmem:[%s7177_s0 + $0x2c] ss:$48 sps:$4 sm:$0xff]  }
  0xe6   : > { %5144 = vmatprep.subr.bf16.mxu1 %v5655_v40  ;;  %v969_v40 = vrot.slane %v5713_v38, %v6305_v41 }
  0xe8   : > { %5123 = vmatpush3.bf16.msra.mxu0 %v5656_v42  ;;  %v976_v42 = vrot.slane %v5715_v39, %v6305_v41 }
  0xe9   : > { %5145 = vmatpush3.bf16.msra.mxu1 %v5657_v43  ;;  %5124 = vmatprep.subr.bf16.mxu0 %v5658_v44  ;;  %v977_v43 = vcombine.high %v969_v40, %v969_v40 }
  0xea   : > { %5146 = vmatprep.subr.bf16.mxu1 %v5659_v45  ;;  %v978_v44 = vcombine.high %v976_v42, %v976_v42 }
  0xec   : > { %5125 = vmatpush3.bf16.msra.mxu0 %v5660_v46 }
  0xed   : > { %5147 = vmatpush3.bf16.msra.mxu1 %v5661_v47  ;;  %5126 = vmatprep.subr.bf16.mxu0 %v5662_v48 }
  0xee   : > { %5148 = vmatprep.subr.bf16.mxu1 %v5663_v49 }
  0xf0   : > { %5127 = vmatpush3.bf16.msra.mxu0 %v5664_v50 }
  0xf1   : > { %5149 = vmatpush3.bf16.msra.mxu1 %v5665_v51  ;;  %5128 = vmatprep.subr.bf16.mxu0 %v5666_v52 }
  0xf2   : > { %5150 = vmatprep.subr.bf16.mxu1 %v5667_v53 }
  0xf4   : > { %5129 = vmatpush3.bf16.msra.mxu0 %v5668_v54 }
  0xf5   : > { %5151 = vmatpush3.bf16.msra.mxu1 %v5669_v55  ;;  %5130 = vmatprep.subr.bf16.mxu0 %v5670_v56 }
  0xf6   : > { %5152 = vmatprep.subr.bf16.mxu1 %v5671_v57 }
  0xf8   : > { %5131 = vmatpush3.bf16.msra.mxu0 %v5672_v58 }
  0xf9   : > { %5153 = vmatpush3.bf16.msra.mxu1 %v5673_v59  ;;  %5132 = vmatprep.subr.bf16.mxu0 %v5674_v60 }
  0xfa   : > { %5154 = vmatprep.subr.bf16.mxu1 %v5675_v61 }
  0xfc   : > { %5133 = vmatpush3.bf16.msra.mxu0 %v5676_v62 }
  0xfd   : > { %5155 = vmatpush3.bf16.msra.mxu1 %v5677_v63  ;;  %5162 = vmatprep.subr.bf16.mxu0 %v5681_v2 }
  0xfe   : > { %5184 = vmatprep.subr.bf16.mxu1 %v5682_v5 }
  0xff   : > { %2508 = vmatmul.mubr.bf16.vlgmr.msra.gmra.mrb[16].mxu0 %v951_v3 }
 0x100   : > { %2548 = vmatmul.mubr.bf16.vlgmr.msra.gmra.mrb[16].mxu1 %v958_v4  ;;  %5163 = vmatpush3.bf16.msra.mxu0 %v5683_v6 }
 0x101   : > { %5185 = vmatpush3.bf16.msra.mxu1 %v5684_v9  ;;  %5164 = vmatprep.subr.bf16.mxu0 %v5685_v10 }
 0x102   : > { %5186 = vmatprep.subr.bf16.mxu1 %v5686_v11  ;;  %2587 = vmatprep.mubr.bf16.mxu0 %v977_v43 }
 0x103   : > { %2627 = vmatprep.mubr.bf16.mxu1 %v978_v44 }
 0x104   : > { %5165 = vmatpush3.bf16.msra.mxu0 %v5687_v12 }
 0x105   : > { %5187 = vmatpush3.bf16.msra.mxu1 %v5688_v13  ;;  %5166 = vmatprep.subr.bf16.mxu0 %v5689_v14 }
 0x106   : > { %5188 = vmatprep.subr.bf16.mxu1 %v5690_v15 }
 0x108   : > { %5167 = vmatpush3.bf16.msra.mxu0 %v5691_v16 }
 0x109   : > { %5189 = vmatpush3.bf16.msra.mxu1 %v5692_v17  ;;  %5168 = vmatprep.subr.bf16.mxu0 %v5693_v18 }
 0x10a   : > { %5190 = vmatprep.subr.bf16.mxu1 %v5694_v19 }
 0x10c   : > { %5169 = vmatpush3.bf16.msra.mxu0 %v5695_v20 }
 0x10d   : > { %5191 = vmatpush3.bf16.msra.mxu1 %v5696_v21  ;;  %5170 = vmatprep.subr.bf16.mxu0 %v5697_v22 }
 0x10e   : > { %5192 = vmatprep.subr.bf16.mxu1 %v5698_v23 }
 0x110   : > { %5171 = vmatpush3.bf16.msra.mxu0 %v5699_v24 }
 0x111   : > { %5193 = vmatpush3.bf16.msra.mxu1 %v5700_v25  ;;  %5172 = vmatprep.subr.bf16.mxu0 %v5701_v26 }
 0x112   : > { %5194 = vmatprep.subr.bf16.mxu1 %v5702_v27 }
 0x114   : > { %5173 = vmatpush3.bf16.msra.mxu0 %v5703_v28 }
 0x115   : > { %5195 = vmatpush3.bf16.msra.mxu1 %v5704_v29  ;;  %5174 = vmatprep.subr.bf16.mxu0 %v5705_v30 }
 0x116   : > { %5196 = vmatprep.subr.bf16.mxu1 %v5706_v31 }
 0x118   : > { %5175 = vmatpush3.bf16.msra.mxu0 %v5707_v32 }
 0x119   : > { %5197 = vmatpush3.bf16.msra.mxu1 %v5708_v33  ;;  %5176 = vmatprep.subr.bf16.mxu0 %v5709_v34 }
 0x11a   : > { %5198 = vmatprep.subr.bf16.mxu1 %v5710_v35 }
 0x11c   : > { %5177 = vmatpush3.bf16.msra.mxu0 %v5711_v36 }
 0x11d   : > { %5199 = vmatpush3.bf16.msra.mxu1 %v5712_v37 }
 0x11f   : > { %2588 = vmatmul.mubr.bf16.vlgmr.msra.gmra.mrb[20].mxu0 %v969_v40 }
 0x120   : > { %2628 = vmatmul.mubr.bf16.vlgmr.msra.gmra.mrb[20].mxu1 %v976_v42 }
 0x152   : > { %v4958_v45 = vpop.f32.mrb[0].mxu0 }
 0x153   : > { %v4980_v46 = vpop.f32.mrb[0].mxu1  ;;  %v4959_v47 = vpop.f32.mrb[1].mxu0 }
 0x154   : > { %v4981_v48 = vpop.f32.mrb[1].mxu1  ;;  %v4960_v49 = vadd.f32 %v4959_v47, %v4958_v45  ;;  %v4961_v51 = vpop.f32.mrb[2].mxu0 }
 0x155   : > { %v4982_v50 = vadd.f32 %v4981_v48, %v4980_v46  ;;  %v4983_v52 = vpop.f32.mrb[2].mxu1  ;;  %v4962_v53 = vpop.f32.mrb[3].mxu0 }
 0x156   : > { %v4984_v54 = vpop.f32.mrb[3].mxu1 }
 0x157   : > { %v2230_v55 = vadd.f32 %v4982_v50, %v4960_v49  ;;  %v2647_v54 = vld [vmem:[%s7179_s2] sm:$0xff] }
 0x172   : > { %v5002_v41 = vpop.f32.mrb[4].mxu0 }
 0x173   : > { %v5024_v56 = vpop.f32.mrb[4].mxu1  ;;  %v5003_v57 = vpop.f32.mrb[5].mxu0 }
 0x174   : > { %v5025_v58 = vpop.f32.mrb[5].mxu1  ;;  %v5004_v59 = vadd.f32 %v5003_v57, %v5002_v41  ;;  %v5005_v61 = vpop.f32.mrb[6].mxu0 }
 0x175   : > { %v5026_v60 = vadd.f32 %v5025_v58, %v5024_v56  ;;  %v5027_v62 = vpop.f32.mrb[6].mxu1  ;;  %v5006_v63 = vpop.f32.mrb[7].mxu0 }
 0x176   : > { %v5028_v0 = vpop.f32.mrb[7].mxu1  ;;  %v2270_v1 = vadd.f32 %v5004_v59, %v2230_v55 }
 0x178   : > { %v2310_v2 = vadd.f32 %v5026_v60, %v2270_v1 }
 0x192   : > { %v5046_v3 = vpop.f32.mrb[8].mxu0 }
 0x193   : > { %v5068_v4 = vpop.f32.mrb[8].mxu1  ;;  %v5047_v5 = vpop.f32.mrb[9].mxu0 }
 0x194   : > { %v5069_v6 = vpop.f32.mrb[9].mxu1  ;;  %v5048_v7 = vadd.f32 %v5047_v5, %v5046_v3  ;;  %v5049_v9 = vpop.f32.mrb[10].mxu0 }
 0x195   : > { %v5070_v8 = vadd.f32 %v5069_v6, %v5068_v4  ;;  %v5071_v10 = vpop.f32.mrb[10].mxu1  ;;  %v5050_v11 = vpop.f32.mrb[11].mxu0 }
 0x196   : > { %v5072_v12 = vpop.f32.mrb[11].mxu1  ;;  %v2350_v13 = vadd.f32 %v5048_v7, %v2310_v2 }
 0x198   : > { %v2390_v14 = vadd.f32 %v5070_v8, %v2350_v13 }
 0x1b2   : > { %v5090_v15 = vpop.f32.mrb[12].mxu0 }
 0x1b3   : > { %v5112_v16 = vpop.f32.mrb[12].mxu1  ;;  %v5091_v17 = vpop.f32.mrb[13].mxu0 }
 0x1b4   : > { %v5113_v18 = vpop.f32.mrb[13].mxu1  ;;  %v5092_v19 = vadd.f32 %v5091_v17, %v5090_v15  ;;  %v5093_v21 = vpop.f32.mrb[14].mxu0 }
 0x1b5   : > { %v5114_v20 = vadd.f32 %v5113_v18, %v5112_v16  ;;  %v5115_v22 = vpop.f32.mrb[14].mxu1  ;;  %v5094_v23 = vpop.f32.mrb[15].mxu0 }
 0x1b6   : > { %v5116_v24 = vpop.f32.mrb[15].mxu1  ;;  %v2430_v25 = vadd.f32 %v5092_v19, %v2390_v14 }
 0x1b8   : > { %v2470_v26 = vadd.f32 %v5114_v20, %v2430_v25 }
 0x1d2   : > { %v5134_v27 = vpop.f32.mrb[16].mxu0 }
 0x1d3   : > { %v5156_v28 = vpop.f32.mrb[16].mxu1  ;;  %v5135_v29 = vpop.f32.mrb[17].mxu0 }
 0x1d4   : > { %v5157_v30 = vpop.f32.mrb[17].mxu1  ;;  %v5136_v31 = vadd.f32 %v5135_v29, %v5134_v27  ;;  %v5137_v33 = vpop.f32.mrb[18].mxu0 }
 0x1d5   : > { %v5158_v32 = vadd.f32 %v5157_v30, %v5156_v28  ;;  %v5159_v34 = vpop.f32.mrb[18].mxu1  ;;  %v5138_v35 = vpop.f32.mrb[19].mxu0 }
 0x1d6   : > { %v5160_v36 = vpop.f32.mrb[19].mxu1  ;;  %v2510_v37 = vadd.f32 %v5136_v31, %v2470_v26 }
 0x1d8   : > { %v2550_v38 = vadd.f32 %v5158_v32, %v2510_v37 }
 0x1f2   : > { %v5178_v39 = vpop.f32.mrb[20].mxu0 }
 0x1f3   : > { %v5200_v40 = vpop.f32.mrb[20].mxu1  ;;  %v5179_v42 = vpop.f32.mrb[21].mxu0 }
 0x1f4   : > { %v5201_v43 = vpop.f32.mrb[21].mxu1  ;;  %v5180_v44 = vadd.f32 %v5179_v42, %v5178_v39  ;;  %v5181_v46 = vpop.f32.mrb[22].mxu0 }
 0x1f5   : > { %v5202_v45 = vadd.f32 %v5201_v43, %v5200_v40  ;;  %v5203_v47 = vpop.f32.mrb[22].mxu1  ;;  %v5182_v48 = vpop.f32.mrb[23].mxu0 }
 0x1f6   : > { %v5204_v49 = vpop.f32.mrb[23].mxu1  ;;  %v2590_v50 = vadd.f32 %v5180_v44, %v2550_v38 }
 0x1f8   : > { %v2630_v51 = vadd.f32 %v5202_v45, %v2590_v50 }
 0x1fa   : > { %v2636_v52 = vcombine.high %v2630_v51, %v2630_v51  ;;  %v2637_v53 = vrot.slane %v2630_v51, 7 }
 0x1fc   : > { %v2638_v55 = vrot.slane %v2636_v52, 7  ;;  %v2642_v41 = vsel %vm2641_vm0, 0.0, %v2637_v53 }
 0x1fd   : > { %v2645_v56 = vsel %vm2644_vm1, %v2642_v41, 0.0 }
 0x1fe   : > { %v2643_v57 = vsel %vm2641_vm0, 0.0, %v2638_v55  ;;  %v2648_v58 = vadd.f32 %v2647_v54, %v2645_v56 }
 0x1ff   : > { %v2646_v59 = vsel %vm2644_vm1, %v2643_v57, 0.0 }
 0x200   : > { %v2649_v60 = vadd.f32 %v2647_v54, %v2646_v59  ;;  %2650 = vst [vmem:[#allocation2] sm:$0xff] %v2648_v58 }
 0x202   : > { %2651 = vst [vmem:[#allocation2 + $0x8] sm:$0xff] %v2649_v60 }
 0x203 PF: > { %v5731_v63 = vld [vmem:[%s6183_s21 + $0x4] ss:$12 sps:$4 sm:$0xff]   ;;  %v5733_v0 = vld [vmem:[%s6183_s21] ss:$12 sps:$4 sm:$0xff]   ;;  %v5977_v1 = vmov 0.0   ;;  %v5978_v27 = vmov 0   ;;  %v2680_v37 = vlaneseq }
 0x204   : > { %5287 = vmatprep.subr.bf16.mxu1 %v5977_v1  ;;  %v5734_v2 = vld [vmem:[%s6183_s21 + $0x8] ss:$12 sps:$4 sm:$0xff]   ;;  %2865 = vmatprep.subr.bf16.mxu0 %v5731_v63  ;;  %v5737_v12 = vld [vmem:[%s6183_s21 + $0x18] ss:$12 sps:$4 sm:$0xff]   ;;  %v5738_v13 = vld [vmem:[%s6183_s21 + $0x20] ss:$12 sps:$4 sm:$0xff]  }
 0x205   : > { %v5735_v3 = vld [vmem:[%s6183_s21 + $0x1c] ss:$12 sps:$4 sm:$0xff]   ;;  %2866 = vmatpush1.bf16.msra.mxu0 %v5733_v0  ;;  %5288 = vmatpush3.bf16.msra.mxu1 %v5734_v2  ;;  %v5739_v14 = vld [vmem:[%s6183_s21 + $0x34] ss:$12 sps:$4 sm:$0xff]   ;;  %v5742_v16 = vld [vmem:[%s6183_s21 + $0x38] ss:$12 sps:$4 sm:$0xff]  }
 0x206   : > { %2867 = vmatprep.subr.bf16.mxu0 %v5735_v3  ;;  %5289 = vmatprep.subr.bf16.mxu1 %v5977_v1  ;;  %v5741_v15 = vld [vmem:[%s6183_s21 + $0x30] ss:$12 sps:$4 sm:$0xff]   ;;  %v5743_v17 = vld [vmem:[%s6183_s21 + $0x4c] ss:$12 sps:$4 sm:$0xff]   ;;  %v5745_v18 = vld [vmem:[%s6183_s21 + $0x48] ss:$12 sps:$4 sm:$0xff]  }
 0x207   : > { %v2655_v61 = vld [vmem:[#allocation2] sm:$0xff]  ;;  %v5746_v19 = vld [vmem:[%s6183_s21 + $0x50] ss:$12 sps:$4 sm:$0xff]   ;;  %v5750_v22 = vld [vmem:[%s6183_s21 + $0x68] ss:$12 sps:$4 sm:$0xff]   ;;  %2897 = vmatprep.mubr.bf16.mxu0 %v5978_v27  ;;  %vm5979_vm2 = vmmov 0  }
 0x208   : > { %2657 = vadd.xlane.f32.xlu0 %v2655_v61  ;;  %v5747_v20 = vld [vmem:[%s6183_s21 + $0x64] ss:$12 sps:$4 sm:$0xff]   ;;  %v5749_v21 = vld [vmem:[%s6183_s21 + $0x60] ss:$12 sps:$4 sm:$0xff]   ;;  %v5751_v23 = vld [vmem:[%s6183_s21 + $0x7c] ss:$12 sps:$4 sm:$0xff]   ;;  %5303 = vmatprep.mubr.msk.bf16.mxu1 %vm5979_vm2, %v5977_v1 }
 0x209   : > { %v2656_v62 = vld [vmem:[#allocation2 + $0x8] sm:$0xff]  ;;  %2868 = vmatpush1.bf16.msra.mxu0 %v5737_v12  ;;  %5290 = vmatpush3.bf16.msra.mxu1 %v5738_v13  ;;  %v5753_v24 = vld [vmem:[%s6183_s21 + $0x78] ss:$12 sps:$4 sm:$0xff]   ;;  %v5755_v26 = vld [vmem:[%s6183_s21 + $0x94] ss:$12 sps:$4 sm:$0xff]   ;;  %v6872_v40 = vshrl.u32 %v2680_v37, 7 }
 0x20a   : > { %5291 = vmatprep.subr.bf16.mxu1 %v5977_v1  ;;  %2869 = vmatprep.subr.bf16.mxu0 %v5739_v14  ;;  %v5754_v25 = vld [vmem:[%s6183_s21 + $0x80] ss:$12 sps:$4 sm:$0xff]   ;;  %v5757_v28 = vld [vmem:[%s6183_s21 + $0x90] ss:$12 sps:$4 sm:$0xff]   ;;  %v5758_v29 = vld [vmem:[%s6183_s21 + $0x98] ss:$12 sps:$4 sm:$0xff]  }
 0x20b   : > { %v5759_v30 = vld [vmem:[%s6183_s21 + $0xac] ss:$12 sps:$4 sm:$0xff]   ;;  %v5761_v31 = vld [vmem:[%s6183_s21 + $0xa8] ss:$12 sps:$4 sm:$0xff]   ;;  %v5762_v32 = vld [vmem:[%s6183_s21 + $0xb0] ss:$12 sps:$4 sm:$0xff]  }
 0x20c   : > { %2659 = vadd.xlane.f32.xlu0 %v2656_v62  ;;  %v2682_v42 = vsub.s32 0, %v6872_v40  ;;  %v6876_v43 = vld [vmem:[%s6193_s8] sm:$0xff]  ;;  %v2688_v47 = vsub.s32 1, %v6872_v40  ;;  %v2727_v41 = vsub.s32 2, %v6872_v40  ;;  %v6889_v56 = vld [vmem:[%s6193_s8 + $0x8] sm:$0xff]  ;;  %vm2997_vm3 = vcmask 261120  }
 0x20d   : > { %2870 = vmatpush1.bf16.msra.mxu0 %v5741_v15  ;;  %5292 = vmatpush3.bf16.msra.mxu1 %v5742_v16  ;;  %s5980_s21 = smov 96   ;;  %s5981_s24 = smov 64   ;;  %vm3479_vm4 = vcmask 1043456   ;;  %vm3379_vm6 = vcmask 64512   ;;  %vm3871_vm7 = vcmask 523264   ;;  %vm3874_vm8 = vcmask 785408  }
 0x20e   : > { %5293 = vmatprep.subr.bf16.mxu1 %v5977_v1  ;;  %2871 = vmatprep.subr.bf16.mxu0 %v5743_v17  ;;  %v2683_v46 = vrot.slane %v6876_v43, %v2682_v42  ;;  %v2689_v51 = vrot.slane %v6876_v43, %v2688_v47  ;;  %v2728_v57 = vrot.slane %v6876_v43, %v2727_v41  ;;  %s5982_s20 = smov 32   ;;  %p4925_p4 = scmp.ne.s32.totalorder %s6059_s17, 1 }
 0x20f   : > { %v2732_v58 = vrot.slane %v6889_v56, %v2727_v41  ;;  %vm5984_vm9 = vmmov (!%p4925_p4), 0  }
 0x211   : > { %2872 = vmatpush1.bf16.msra.mxu0 %v5745_v18  ;;  %5294 = vmatpush3.bf16.msra.mxu1 %v5746_v19 }
 0x212   : > { %5295 = vmatprep.subr.bf16.mxu1 %v5977_v1  ;;  %2873 = vmatprep.subr.bf16.mxu0 %v5747_v20  ;;  %v2654_v20 = vld [vmem:[%s6193_s8 + $0x10] sm:$0xff] }
 0x215   : > { %2874 = vmatpush1.bf16.msra.mxu0 %v5749_v21  ;;  %5296 = vmatpush3.bf16.msra.mxu1 %v5750_v22 }
 0x216   : > { %2875 = vmatprep.subr.bf16.mxu0 %v5751_v23  ;;  %5297 = vmatprep.subr.bf16.mxu1 %v5977_v1  ;;  %v2736_v23 = vrot.slane %v2654_v20, %v2727_v41 }
 0x219   : > { %2876 = vmatpush1.bf16.msra.mxu0 %v5753_v24  ;;  %5298 = vmatpush3.bf16.msra.mxu1 %v5754_v25 }
 0x21a   : > { %2877 = vmatprep.subr.bf16.mxu0 %v5755_v26  ;;  %5299 = vmatprep.subr.bf16.mxu1 %v5977_v1 }
 0x21d   : > { %2878 = vmatpush1.bf16.msra.mxu0 %v5757_v28  ;;  %5300 = vmatpush3.bf16.msra.mxu1 %v5758_v29 }
 0x21e   : > { %2879 = vmatprep.subr.bf16.mxu0 %v5759_v30  ;;  %5301 = vmatprep.subr.bf16.mxu1 %v5977_v1 }
 0x221   : > { %2880 = vmatpush1.bf16.msra.mxu0 %v5761_v31  ;;  %5302 = vmatpush3.bf16.msra.mxu1 %v5762_v32 }
 0x222   : > { %5307 = vmatprep.subr.bf16.mxu1 %v5977_v1  ;;  %5331 = vmatprep.subr.bf16.mxu0 %v5977_v1 }
 0x295   : > { %v2658_v4 = vpop.xlane.xlu0 %2657 }
 0x296   : > { %v2662_v5 = vmul.f32 0.0078125, %v2658_v4 }
 0x298   : > { %v6832_v6 = vsub.f32 %v2655_v61, %v2662_v5 }
 0x299   : > { %v2660_v7 = vpop.xlane.xlu0 %2659 }
 0x29a   : > { %v2663_v8 = vmul.f32 0.0078125, %v2660_v7  ;;  %v2666_v9 = vmul.f32 %v6832_v6, %v6832_v6 }
 0x29c   : > { %v6836_v10 = vsub.f32 %v2656_v62, %v2663_v8  ;;  %2668 = vadd.xlane.f32.xlu1 %v2666_v9 }
 0x29e   : > { %v2667_v11 = vmul.f32 %v6836_v10, %v6836_v10 }
 0x2a0   : > { %2670 = vadd.xlane.f32.xlu1 %v2667_v11 }
 0x329   : > { %v2669_v33 = vpop.xlane.xlu1 %2668 }
 0x32a   : > { %v2672_v34 = vmul.f32 0.0078125, %v2669_v33 }
 0x32c   : > { %v2674_v35 = vadd.f32 1e-06, %v2672_v34 }
 0x32d   : > { %v2671_v36 = vpop.xlane.xlu1 %2670 }
 0x32e   : > { %5811 = vrsqrt.f32 %v2674_v35  ;;  %v2673_v38 = vmul.f32 0.0078125, %v2671_v36 }
 0x330   : > { %v2675_v39 = vadd.f32 1e-06, %v2673_v38 }
 0x332   : > { %5813 = vrsqrt.f32 %v2675_v39 }
 0x338   : > { %v5812_v44 = vpop.eup %5811 }
 0x339   : > { %v2678_v45 = vmul.f32 %v5812_v44, %v6832_v6 }
 0x33b   : > { %v2684_v50 = vmul.f32 %v2683_v46, %v2678_v45  ;;  %v3367_v45 = vand.u32 127, %v2680_v37 }
 0x33c   : > { %v5814_v48 = vpop.eup %5813 }
 0x33d   : > { %v2679_v49 = vmul.f32 %v5814_v48, %v6836_v10  ;;  %v2690_v53 = vadd.f32 %v2689_v51, %v2684_v50  ;;  %vm3368_vm5 = vcmp.lt.s32.totalorder %v3367_v45, 5 }
 0x33f   : > { %v2685_v52 = vmul.f32 %v2683_v46, %v2679_v49 }
 0x341   : > { %v2691_v54 = vadd.f32 %v2689_v51, %v2685_v52 }
 0x343   : > { %v2692_v55 = vpack.c.bf16 %v2691_v54, %v2690_v53 }
 0x345   : > { %2898 = vmatmul.mubr.bf16.vlgmr.msra.gmra.mrb[0].mxu0 %v2692_v55  ;;  %5304 = vmatmul.mubr.bf16.vlgmr.msra.gmra.mrb[0].mxu1 %v2692_v55 }
 0x346   : > { %5309 = vmatprep.mubr.msk.bf16.mxu1 %vm5979_vm2, %v5977_v1  ;;  %5333 = vmatprep.mubr.msk.bf16.mxu0 %vm5979_vm2, %v5977_v1 }
 0x418   : > { %v2899_v59 = vpop.f32.mrb[0].mxu0  ;;  %v2942_v60 = vpop.f32.mrb[0].mxu1 }
 0x419   : > { %v2900_v61 = vadd.f32 %v2899_v59, %v2728_v57  ;;  %v2901_v62 = vpop.f32.mrb[1].mxu0  ;;  %v5305_v63 = vpop.f32.mrb[1].mxu1  ;;  %v2943_v28 = vadd.f32 %v2942_v60, %v2736_v23 }
 0x41a   : > { %v2902_v0 = vadd.f32 %v2901_v62, %v2732_v58  ;;  %v2903_v2 = vpop.f32.mrb[2].mxu0  ;;  %v6893_v3 = vpop.f32.mrb[2].mxu1 }
 0x41b   : > { %v2949_v4 = vpack.c.bf16 %v2900_v61, %v2900_v61  ;;  %v2905_v5 = vpop.f32.mrb[3].mxu0  ;;  %v5306_v6 = vpop.f32.mrb[3].mxu1  ;;  %v2904_v11 = vadd.f32 %v2903_v2, %v2728_v57  ;;  %v6932_v31 = vpack.c.bf16 %v2943_v28, %v2943_v28  ;;  %v2946_v36 = vadd.f32 %v6893_v3, %v2736_v23 }
 0x41c   : > { %v2950_v7 = vpack.c.bf16 %v2902_v0, %v2902_v0  ;;  %v2906_v8 = vadd.f32 %v2905_v5, %v2732_v58 }
 0x41d   : > { %2957 = vrot.lane.b32.xlu1 %v2949_v4, %s5980_s21  ;;  %v2952_v12 = vpack.c.bf16 %v2904_v11, %v2904_v11  ;;  %v3481_v34 = vsel %vm3479_vm4, %v6932_v31, 0  ;;  %v6951_v39 = vpack.c.bf16 %v2946_v36, %v2946_v36 }
 0x41e   : > { %v2953_v9 = vpack.c.bf16 %v2906_v8, %v2906_v8  ;;  %2971 = vrot.lane.b32.xlu0 %v2950_v7, %s5980_s21  ;;  %v3002_v10 = vsel %vm2997_vm3, %v2950_v7, 0 }
 0x41f   : > { %5308 = vmatpush3.bf16.xpose.msra.mxu1 %v3002_v10  ;;  %v3527_v44 = vsel %vm3479_vm4, %v6951_v39, 0 }
 0x420   : > { %5313 = vmatprep.subr.bf16.mxu1 %v5977_v1  ;;  %v3048_v13 = vsel %vm2997_vm3, %v2953_v9, 0 }
 0x421   : > { %2973 = vrot.lane.b32.xlu1 %v2953_v9, %s5980_s21 }
 0x422   : > { %2975 = vrot.lane.b32.xlu0 %v2950_v7, %s5981_s24 }
 0x425   : > { %2959 = vrot.lane.b32.xlu1 %v2952_v12, %s5980_s21 }
 0x426   : > { %2961 = vrot.lane.b32.xlu0 %v2949_v4, %s5981_s24  ;;  %5310 = vmatmul.mubr.msk.bf16.vlgmr.msra.gmra.mrb[4].mxu1 %vm2997_vm3, %v2949_v4 }
 0x427   : > { %5314 = vmatpush3.bf16.xpose.msra.mxu1 %v3048_v13  ;;  %5315 = vmatprep.mubr.msk.bf16.mxu1 %vm5979_vm2, %v5977_v1 }
 0x428   : > { %5319 = vmatprep.subr.bf16.mxu1 %v5977_v1 }
 0x429   : > { %2977 = vrot.lane.b32.xlu1 %v2953_v9, %s5981_s24 }
 0x42a   : > { %2979 = vrot.lane.b32.xlu0 %v2950_v7, %s5982_s20 }
 0x42d   : > { %2963 = vrot.lane.b32.xlu1 %v2952_v12, %s5981_s24 }
 0x42e   : > { %2965 = vrot.lane.b32.xlu0 %v2949_v4, %s5982_s20  ;;  %5316 = vmatmul.mubr.msk.bf16.vlgmr.msra.gmra.mrb[8].mxu1 %vm2997_vm3, %v2952_v12 }
 0x42f   : > { %5321 = vmatprep.mubr.msk.bf16.mxu1 %vm5979_vm2, %v5977_v1 }
 0x431   : > { %2981 = vrot.lane.b32.xlu1 %v2953_v9, %s5982_s20 }
 0x435   : > { %2967 = vrot.lane.b32.xlu1 %v2952_v12, %s5982_s20 }
 0x48f   : > { %v2958_v14 = vpop.permute.xlu1 %2957 }
 0x490   : > { %v2972_v15 = vpop.permute.xlu0 %2971 }
 0x491   : > { %v3094_v16 = vsel %vm2997_vm3, %v2972_v15, 0 }
 0x492   : > { %5320 = vmatpush3.bf16.xpose.msra.mxu1 %v3094_v16 }
 0x493   : > { %v2974_v17 = vpop.permute.xlu1 %2973  ;;  %5325 = vmatprep.subr.bf16.mxu1 %v5977_v1 }
 0x494   : > { %v2976_v18 = vpop.permute.xlu0 %2975  ;;  %v3140_v24 = vsel %vm2997_vm3, %v2974_v17, 0 }
 0x495   : > { %v3186_v19 = vsel %vm2997_vm3, %v2976_v18, 0 }
 0x496   : > { %5332 = vmatpush3.bf16.xpose.msra.mxu0 %v3186_v19 }
 0x497   : > { %v2960_v21 = vpop.permute.xlu1 %2959  ;;  %5343 = vmatprep.subr.bf16.mxu0 %v5977_v1 }
 0x498   : > { %v2962_v22 = vpop.permute.xlu0 %2961 }
 0x499   : > { %5322 = vmatmul.mubr.msk.bf16.vlgmr.msra.gmra.mrb[12].mxu1 %vm2997_vm3, %v2958_v14 }
 0x49a   : > { %5326 = vmatpush3.bf16.xpose.msra.mxu1 %v3140_v24  ;;  %5327 = vmatprep.mubr.msk.bf16.mxu1 %vm5979_vm2, %v5977_v1 }
 0x49b   : > { %v2978_v25 = vpop.permute.xlu1 %2977  ;;  %5337 = vmatprep.subr.bf16.mxu1 %v5977_v1 }
 0x49c   : > { %v2980_v26 = vpop.permute.xlu0 %2979  ;;  %v3232_v32 = vsel %vm2997_vm3, %v2978_v25, 0 }
 0x49d   : > { %v3278_v29 = vsel %vm2997_vm3, %v2980_v26, 0  ;;  %5334 = vmatmul.mubr.msk.bf16.vlgmr.msra.gmra.mrb[4].mxu0 %vm2997_vm3, %v2962_v22 }
 0x49e   : > { %5344 = vmatpush3.bf16.xpose.msra.mxu0 %v3278_v29  ;;  %5345 = vmatprep.mubr.msk.bf16.mxu0 %vm5979_vm2, %v5977_v1 }
 0x49f   : > { %5355 = vmatprep.subr.bf16.mxu0 %v5977_v1  ;;  %v2964_v30 = vpop.permute.xlu1 %2963 }
 0x4a0   : > { %v2966_v33 = vpop.permute.xlu0 %2965 }
 0x4a1   : > { %5328 = vmatmul.mubr.msk.bf16.vlgmr.msra.gmra.mrb[16].mxu1 %vm2997_vm3, %v2960_v21 }
 0x4a2   : > { %5338 = vmatpush3.bf16.xpose.msra.mxu1 %v3232_v32  ;;  %5339 = vmatprep.mubr.msk.bf16.mxu1 %vm5979_vm2, %v5977_v1 }
 0x4a3   : > { %5349 = vmatprep.subr.bf16.mxu1 %v5977_v1  ;;  %v2982_v35 = vpop.permute.xlu1 %2981 }
 0x4a4   : > { %v3324_v38 = vsel %vm2997_vm3, %v2982_v35, 0 }
 0x4a5   : > { %5346 = vmatmul.mubr.msk.bf16.vlgmr.msra.gmra.mrb[8].mxu0 %vm2997_vm3, %v2966_v33 }
 0x4a6   : > { %5356 = vmatpush3.bf16.msra.mxu0 %v3481_v34  ;;  %5357 = vmatprep.mubr.msk.bf16.mxu0 %vm5979_vm2, %v5977_v1 }
 0x4a7   : > { %5367 = vmatprep.subr.bf16.mxu0 %v5977_v1  ;;  %v2968_v42 = vpop.permute.xlu1 %2967 }
 0x4a9   : > { %5340 = vmatmul.mubr.msk.bf16.vlgmr.msra.gmra.mrb[20].mxu1 %vm2997_vm3, %v2964_v30 }
 0x4aa   : > { %5350 = vmatpush3.bf16.xpose.msra.mxu1 %v3324_v38  ;;  %5351 = vmatprep.mubr.msk.bf16.mxu1 %vm5979_vm2, %v5977_v1 }
 0x4ab   : > { %5361 = vmatprep.subr.bf16.mxu1 %v5977_v1 }
 0x4b1   : > { %5352 = vmatmul.mubr.msk.bf16.vlgmr.msra.gmra.mrb[24].mxu1 %vm2997_vm3, %v2968_v42 }
 0x4b2   : > { %5362 = vmatpush3.bf16.msra.mxu1 %v3527_v44  ;;  %5363 = vmatprep.mubr.msk.bf16.mxu1 %vm5979_vm2, %v5977_v1 }
 0x4b3   : > { %5373 = vmatprep.subr.bf16.mxu1 %v5977_v1 }
 0x4f9   : > { %v3038_v46 = vpop.f32.mrb[4].mxu1 }
 0x4fa   : > { %v3371_v47 = vsel %vm3368_vm5, %v3038_v46, -1e+30  ;;  %v5311_v48 = vpop.f32.mrb[5].mxu1 }
 0x4fb   : > { %v3041_v49 = vpop.f32.mrb[6].mxu1  ;;  %v3380_v50 = vsel %vm3379_vm6, %v3371_v47, -inf }
 0x4fc   : > { %3381 = vmax.xlane.f32.xlu0 %v3380_v50  ;;  %v5312_v51 = vpop.f32.mrb[7].mxu1 }
 0x501   : > { %v3084_v52 = vpop.f32.mrb[8].mxu1 }
 0x502   : > { %v3372_v53 = vsel %vm3368_vm5, %v3084_v52, -1e+30  ;;  %v5317_v54 = vpop.f32.mrb[9].mxu1 }
 0x503   : > { %v3087_v55 = vpop.f32.mrb[10].mxu1  ;;  %v3383_v41 = vsel %vm3379_vm6, %v3372_v53, -inf }
 0x504   : > { %3384 = vmax.xlane.f32.xlu1 %v3383_v41  ;;  %v5318_v37 = vpop.f32.mrb[11].mxu1 }
 0x56c   : > { %v3130_v57 = vpop.f32.mrb[12].mxu1 }
 0x56d   : > { %v3373_v58 = vsel %vm3368_vm5, %v3130_v57, -1e+30  ;;  %v5323_v59 = vpop.f32.mrb[13].mxu1 }
 0x56e   : > { %v3133_v60 = vpop.f32.mrb[14].mxu1  ;;  %v3386_v61 = vsel %vm3379_vm6, %v3373_v58, -inf }
 0x56f   : > { %3387 = vmax.xlane.f32.xlu0 %v3386_v61  ;;  %v5324_v62 = vpop.f32.mrb[15].mxu1 }
 0x570   : > { %v3222_v63 = vpop.f32.mrb[4].mxu0 }
 0x571   : > { %v5335_v0 = vpop.f32.mrb[5].mxu0  ;;  %v6969_v9 = vsel %vm3368_vm5, %v3222_v63, -1e+30 }
 0x572   : > { %v3225_v2 = vpop.f32.mrb[6].mxu0  ;;  %v3392_v14 = vsel %vm3379_vm6, %v6969_v9, -inf }
 0x573   : > { %v5336_v3 = vpop.f32.mrb[7].mxu0 }
 0x574   : > { %v3176_v4 = vpop.f32.mrb[16].mxu1 }
 0x575   : > { %v3374_v5 = vsel %vm3368_vm5, %v3176_v4, -1e+30  ;;  %v5329_v6 = vpop.f32.mrb[17].mxu1 }
 0x576   : > { %v3179_v7 = vpop.f32.mrb[18].mxu1  ;;  %v3389_v8 = vsel %vm3379_vm6, %v3374_v5, -inf }
 0x577   : > { %3390 = vmax.xlane.f32.xlu0 %v3389_v8  ;;  %v5330_v10 = vpop.f32.mrb[19].mxu1 }
 0x578   : > { %v3314_v11 = vpop.f32.mrb[8].mxu0 }
 0x579   : > { %v5347_v12 = vpop.f32.mrb[9].mxu0  ;;  %v6974_v15 = vsel %vm3368_vm5, %v3314_v11, -1e+30 }
 0x57a   : > { %v3317_v13 = vpop.f32.mrb[10].mxu0  ;;  %v3398_v21 = vsel %vm3379_vm6, %v6974_v15, -inf }
 0x57b   : > { %v5348_v16 = vpop.f32.mrb[11].mxu0  ;;  %3393 = vmax.xlane.f32.xlu0 %v3392_v14 }
 0x57c   : > { %v3268_v17 = vpop.f32.mrb[20].mxu1 }
 0x57d   : > { %v3376_v18 = vsel %vm3368_vm5, %v3268_v17, -1e+30  ;;  %v5341_v19 = vpop.f32.mrb[21].mxu1 }
 0x57e   : > { %v3271_v20 = vpop.f32.mrb[22].mxu1  ;;  %v3395_v22 = vsel %vm3379_vm6, %v3376_v18, -inf }
 0x57f   : > { %3399 = vmax.xlane.f32.xlu0 %v3398_v21  ;;  %3396 = vmax.xlane.f32.xlu1 %v3395_v22  ;;  %v5342_v23 = vpop.f32.mrb[23].mxu1 }
 0x584   : > { %v3360_v24 = vpop.f32.mrb[24].mxu1 }
 0x585   : > { %v3378_v25 = vsel %vm3368_vm5, %v3360_v24, -1e+30  ;;  %v5353_v26 = vpop.f32.mrb[25].mxu1 }
 0x586   : > { %v3363_v28 = vpop.f32.mrb[26].mxu1  ;;  %v3401_v29 = vsel %vm3379_vm6, %v3378_v25, -inf }
 0x587   : > { %3402 = vmax.xlane.f32.xlu1 %v3401_v29  ;;  %v5354_v30 = vpop.f32.mrb[27].mxu1 }
 0x589   : > { %v3382_v32 = vpop.xlane.xlu0 %3381 }
 0x58a   : > { %v3404_v33 = vsub.f32 %v3371_v47, %v3382_v32 }
 0x58c   : > { %v3412_v34 = vmul.f32 1.442695, %v3404_v33 }
 0x58e   : > { %5815 = vpow2.f32 %v3412_v34 }
 0x591   : > { %v3385_v35 = vpop.xlane.xlu1 %3384 }
 0x592   : > { %v3405_v36 = vsub.f32 %v3372_v53, %v3385_v35 }
 0x594   : > { %v3414_v38 = vmul.f32 1.442695, %v3405_v36 }
 0x596   : > { %5817 = vpow2.f32 %v3414_v38 }
 0x598   : > { %v5816_v42 = vpop.eup %5815 }
 0x599   : > { %v3428_v44 = vsel %vm3379_vm6, %v5816_v42, 0.0 }
 0x59a   : > { %3429 = vadd.xlane.f32.xlu0 %v3428_v44 }
 0x5a0   : > { %v5818_v45 = vpop.eup %5817 }
 0x5a1   : > { %v3431_v46 = vsel %vm3379_vm6, %v5818_v45, 0.0 }
 0x5a2   : > { %3432 = vadd.xlane.f32.xlu1 %v3431_v46 }
 0x5b3   : > { %2987 = vrot.lane.b32.xlu1 %v6951_v39, %s5980_s21 }
 0x5b7   : > { %2989 = vrot.lane.b32.xlu1 %v6932_v31, %s5981_s24 }
 0x5bb   : > { %2991 = vrot.lane.b32.xlu1 %v6951_v39, %s5981_s24 }
 0x5fc   : > { %v3388_v47 = vpop.xlane.xlu0 %3387 }
 0x5fd   : > { %v3406_v48 = vsub.f32 %v3373_v58, %v3388_v47 }
 0x5ff   : > { %v3416_v49 = vmul.f32 1.442695, %v3406_v48 }
 0x601   : > { %5819 = vpow2.f32 %v3416_v49 }
 0x604   : > { %v3391_v50 = vpop.xlane.xlu0 %3390 }
 0x605   : > { %v3407_v51 = vsub.f32 %v3374_v5, %v3391_v50 }
 0x607   : > { %v3418_v52 = vmul.f32 1.442695, %v3407_v51 }
 0x608   : > { %v3394_v63 = vpop.xlane.xlu0 %3393 }
 0x609   : > { %5821 = vpow2.f32 %v3418_v52  ;;  %v3408_v6 = vsub.f32 %v6969_v9, %v3394_v63 }
 0x60b   : > { %v6990_v53 = vpop.eup %5819  ;;  %v3420_v8 = vmul.f32 1.442695, %v3408_v6  ;;  %v5763_v6 = vld [vmem:[%s6178_s27] sm:$0xff]  }
 0x60c   : > { %v3397_v54 = vpop.xlane.xlu1 %3396  ;;  %v3434_v55 = vsel %vm3379_vm6, %v6990_v53, 0.0  ;;  %v3400_v3 = vpop.xlane.xlu0 %3399 }
 0x60d   : > { %v3409_v41 = vsub.f32 %v3376_v18, %v3397_v54  ;;  %3435 = vadd.xlane.f32.xlu0 %v3434_v55  ;;  %v3410_v10 = vsub.f32 %v6974_v15, %v3400_v3 }
 0x60f   : > { %v3422_v37 = vmul.f32 1.442695, %v3409_v41  ;;  %v3424_v13 = vmul.f32 1.442695, %v3410_v10  ;;  %v5764_v10 = vld [vmem:[%s6178_s27 + $0x8] sm:$0xff]  }
 0x611   : > { %5823 = vpow2.f32 %v3422_v37 }
 0x613   : > { %v6994_v57 = vpop.eup %5821 }
 0x614   : > { %v3403_v59 = vpop.xlane.xlu1 %3402  ;;  %v3437_v58 = vsel %vm3379_vm6, %v6994_v57, 0.0 }
 0x615   : > { %v3411_v60 = vsub.f32 %v3378_v25, %v3403_v59  ;;  %3438 = vadd.xlane.f32.xlu1 %v3437_v58 }
 0x617   : > { %v3426_v61 = vmul.f32 1.442695, %v3411_v60 }
 0x619   : > { %5825 = vpow2.f32 %v3426_v61 }
 0x61b   : > { %v6998_v62 = vpop.eup %5823 }
 0x61c   : > { %v3443_v0 = vsel %vm3379_vm6, %v6998_v62, 0.0 }
 0x61d   : > { %3444 = vadd.xlane.f32.xlu1 %v3443_v0 }
 0x623   : > { %v7002_v2 = vpop.eup %5825  ;;  %2985 = vrot.lane.b32.xlu0 %v6932_v31, %s5980_s21 }
 0x624   : > { %v3449_v4 = vsel %vm3379_vm6, %v7002_v2, 0.0 }
 0x625   : > { %3450 = vadd.xlane.f32.xlu1 %v3449_v4 }
 0x627   : > { %v3430_v5 = vpop.xlane.xlu0 %3429 }
 0x628   : > { %5827 = vrcp.f32 %v3430_v5 }
 0x62f   : > { %v3433_v7 = vpop.xlane.xlu1 %3432 }
 0x630   : > { %5829 = vrcp.f32 %v3433_v7 }
 0x631   : > { %5831 = vpow2.f32 %v3420_v8 }
 0x632   : > { %v5828_v11 = vpop.eup %5827  ;;  %5833 = vpow2.f32 %v3424_v13 }
 0x633   : > { %v3460_v12 = vmul.f32 %v5828_v11, %v5816_v42  ;;  %v2988_v17 = vpop.permute.xlu1 %2987 }
 0x634   : > { %v3619_v19 = vsel %vm3479_vm4, %v2988_v17, 0  ;;  %v5766_v17 = vld [vmem:[%s6178_s27 + $0x18] sm:$0xff]  }
 0x635   : > { %v3468_v14 = vpack.c.bf16 %v3460_v12, %v3460_v12  ;;  %v5765_v12 = vld [vmem:[%s6178_s27 + $0x10] sm:$0xff]  }
 0x636   : > { %2995 = vrot.lane.b32.xlu1 %v6951_v39, %s5982_s20 }
 0x637   : > { %5358 = vmatmul.mubr.msk.bf16.vlgmr.msra.gmra.mrb[12].mxu0 %vm3379_vm6, %v3468_v14  ;;  %v2990_v22 = vpop.permute.xlu1 %2989 }
 0x638   : > { %5369 = vmatprep.mubr.msk.bf16.mxu0 %vm5979_vm2, %v5977_v1  ;;  %v3665_v33 = vsel %vm3479_vm4, %v2990_v22, 0 }
 0x63a   : > { %v5830_v9 = vpop.eup %5829 }
 0x63b   : > { %v3461_v16 = vmul.f32 %v5830_v9, %v5818_v45  ;;  %v5832_v15 = vpop.eup %5831  ;;  %v2992_v24 = vpop.permute.xlu1 %2991 }
 0x63c   : > { %v3440_v39 = vsel %vm3379_vm6, %v5832_v15, 0.0  ;;  %v5834_v20 = vpop.eup %5833  ;;  %v3711_v38 = vsel %vm3479_vm4, %v2992_v24, 0 }
 0x63d   : > { %v3469_v18 = vpack.c.bf16 %v3461_v16, %v3461_v16  ;;  %v3446_v21 = vsel %vm3379_vm6, %v5834_v20, 0.0 }
 0x63f   : > { %5364 = vmatmul.mubr.msk.bf16.vlgmr.msra.gmra.mrb[28].mxu1 %vm3379_vm6, %v3469_v18 }
 0x640   : > { %5374 = vmatpush3.bf16.msra.mxu1 %v3619_v19  ;;  %5375 = vmatprep.mubr.msk.bf16.mxu1 %vm5979_vm2, %v5977_v1 }
 0x641   : > { %5385 = vmatprep.subr.bf16.mxu1 %v5977_v1 }
 0x642   : > { %3441 = vadd.xlane.f32.xlu0 %v3440_v39 }
 0x646   : > { %3447 = vadd.xlane.f32.xlu0 %v3446_v21 }
 0x65c   : > { %2993 = vrot.lane.b32.xlu0 %v6932_v31, %s5982_s20 }
 0x69a   : > { %v3436_v23 = vpop.xlane.xlu0 %3435 }
 0x69b   : > { %5835 = vrcp.f32 %v3436_v23 }
 0x69e   : > { %v2986_v25 = vpop.permute.xlu0 %2985 }
 0x69f   : > { %v3573_v26 = vsel %vm3479_vm4, %v2986_v25, 0 }
 0x6a0   : > { %5368 = vmatpush3.bf16.msra.mxu0 %v3573_v26  ;;  %v5768_v26 = vld [vmem:[%s6178_s27 + $0x28] sm:$0xff]  }
 0x6a1   : > { %5379 = vmatprep.subr.bf16.mxu0 %v5977_v1 }
 0x6a2   : > { %v3439_v28 = vpop.xlane.xlu1 %3438 }
 0x6a3   : > { %5837 = vrcp.f32 %v3439_v28  ;;  %v5769_v28 = vld [vmem:[%s6178_s27 + $0x30] sm:$0xff]  }
 0x6a5   : > { %v5836_v29 = vpop.eup %5835 }
 0x6a6   : > { %v3462_v30 = vmul.f32 %v5836_v29, %v6990_v53 }
 0x6a8   : > { %v3470_v32 = vpack.c.bf16 %v3462_v30, %v3462_v30  ;;  %v5770_v30 = vld [vmem:[%s6178_s27 + $0x38] sm:$0xff]  }
 0x6aa   : > { %5370 = vmatmul.mubr.msk.bf16.vlgmr.msra.gmra.mrb[16].mxu0 %vm3379_vm6, %v3470_v32  ;;  %v3445_v31 = vpop.xlane.xlu1 %3444 }
 0x6ab   : > { %5380 = vmatpush3.bf16.msra.mxu0 %v3665_v33  ;;  %5381 = vmatprep.mubr.msk.bf16.mxu0 %vm5979_vm2, %v5977_v1  ;;  %5839 = vrcp.f32 %v3445_v31 }
 0x6ac   : > { %5391 = vmatprep.subr.bf16.mxu0 %v5977_v1 }
 0x6ad   : > { %v5838_v34 = vpop.eup %5837 }
 0x6ae   : > { %v3463_v35 = vmul.f32 %v5838_v34, %v6994_v57 }
 0x6b0   : > { %v3471_v36 = vpack.c.bf16 %v3463_v35, %v3463_v35 }
 0x6b2   : > { %5376 = vmatmul.mubr.msk.bf16.vlgmr.msra.gmra.mrb[32].mxu1 %vm3379_vm6, %v3471_v36  ;;  %v3451_v42 = vpop.xlane.xlu1 %3450 }
 0x6b3   : > { %5386 = vmatpush3.bf16.msra.mxu1 %v3711_v38  ;;  %5841 = vrcp.f32 %v3451_v42  ;;  %5387 = vmatprep.mubr.msk.bf16.mxu1 %vm5979_vm2, %v5977_v1 }
 0x6b4   : > { %5397 = vmatprep.subr.bf16.mxu1 %v5977_v1 }
 0x6b5   : > { %v5840_v44 = vpop.eup %5839 }
 0x6b6   : > { %v3465_v45 = vmul.f32 %v5840_v44, %v6998_v62  ;;  %v2996_v46 = vpop.permute.xlu1 %2995 }
 0x6b7   : > { %v3803_v48 = vsel %vm3479_vm4, %v2996_v46, 0 }
 0x6b8   : > { %v3473_v47 = vpack.c.bf16 %v3465_v45, %v3465_v45 }
 0x6ba   : > { %5388 = vmatmul.mubr.msk.bf16.vlgmr.msra.gmra.mrb[36].mxu1 %vm3379_vm6, %v3473_v47 }
 0x6bb   : > { %5398 = vmatpush3.bf16.msra.mxu1 %v3803_v48  ;;  %5399 = vmatprep.mubr.msk.bf16.mxu1 %vm5979_vm2, %v5977_v1 }
 0x6bd   : > { %v5842_v49 = vpop.eup %5841 }
 0x6be   : > { %v3467_v50 = vmul.f32 %v5842_v49, %v7002_v2 }
 0x6c0   : > { %v3475_v51 = vpack.c.bf16 %v3467_v50, %v3467_v50 }
 0x6c2   : > { %5400 = vmatmul.mubr.msk.bf16.vlgmr.msra.gmra.mrb[40].mxu1 %vm3379_vm6, %v3475_v51 }
 0x6c3   : > { %4160 = vmatprep.mubr.bf16.mxu1 %v5978_v27 }
 0x6cf   : > { %v3442_v52 = vpop.xlane.xlu0 %3441 }
 0x6d0   : > { %5843 = vrcp.f32 %v3442_v52 }
 0x6d3   : > { %v3448_v53 = vpop.xlane.xlu0 %3447 }
 0x6d4   : > { %5845 = vrcp.f32 %v3448_v53 }
 0x6d7   : > { %v2994_v41 = vpop.permute.xlu0 %2993 }
 0x6d8   : > { %v3757_v59 = vsel %vm3479_vm4, %v2994_v41, 0 }
 0x6da   : > { %v5844_v54 = vpop.eup %5843 }
 0x6db   : > { %v3464_v55 = vmul.f32 %v5844_v54, %v5832_v15  ;;  %v5767_v15 = vld [vmem:[%s6178_s27 + $0x20] sm:$0xff]  }
 0x6dd   : > { %v3472_v37 = vpack.c.bf16 %v3464_v55, %v3464_v55 }
 0x6de   : > { %v5846_v57 = vpop.eup %5845 }
 0x6df   : > { %5382 = vmatmul.mubr.msk.bf16.vlgmr.msra.gmra.mrb[20].mxu0 %vm3379_vm6, %v3472_v37  ;;  %v3466_v58 = vmul.f32 %v5846_v57, %v5834_v20 }
 0x6e0   : > { %5392 = vmatpush3.bf16.msra.mxu0 %v3757_v59  ;;  %5393 = vmatprep.mubr.msk.bf16.mxu0 %vm5979_vm2, %v5977_v1 }
 0x6e1   : > { %5403 = vmatprep.subr.bf16.mxu0 %v5977_v1  ;;  %v3474_v27 = vpack.c.bf16 %v3466_v58, %v3466_v58  ;;  %v3896_v58 = vsub.s32 3, %v6872_v40 }
 0x6e7   : > { %5394 = vmatmul.mubr.msk.bf16.vlgmr.msra.gmra.mrb[24].mxu0 %vm3379_vm6, %v3474_v27  ;;  %v3897_v27 = vrot.slane %v6876_v43, %v3896_v58  ;;  %v5801_v58 = vld [vmem:[%s6163_s19 + $0x58] sm:$0xff]  }
 0x6e8   : > { %5419 = vmatprep.mubr.msk.bf16.mxu0 %vm5979_vm2, %v5977_v1  ;;  %5404 = vmatpush3.bf16.msra.mxu0 %v5763_v6 }
 0x6e9   : > { %5405 = vmatprep.subr.bf16.mxu0 %v5977_v1 }
 0x6ec   : > { %5406 = vmatpush3.bf16.msra.mxu0 %v5764_v10  ;;  %v5776_v10 = vld [vmem:[%s6188_s26 + $0x14] ss:$8 sps:$4 sm:$0xff]  }
 0x6ed   : > { %5407 = vmatprep.subr.bf16.mxu0 %v5977_v1 }
 0x6f0   : > { %5408 = vmatpush3.bf16.msra.mxu0 %v5765_v12 }
 0x6f1   : > { %5409 = vmatprep.subr.bf16.mxu0 %v5977_v1 }
 0x6f4   : > { %5410 = vmatpush3.bf16.msra.mxu0 %v5766_v17 }
 0x6f5   : > { %5411 = vmatprep.subr.bf16.mxu0 %v5977_v1 }
 0x6f8   : > { %5412 = vmatpush3.bf16.msra.mxu0 %v5767_v15 }
 0x6f9   : > { %5413 = vmatprep.subr.bf16.mxu0 %v5977_v1 }
 0x6fc   : > { %5414 = vmatpush3.bf16.msra.mxu0 %v5768_v26  ;;  %v5789_v26 = vld [vmem:[%s6188_s26 + $0x60] ss:$8 sps:$4 sm:$0xff]  }
 0x6fd   : > { %5415 = vmatprep.subr.bf16.mxu0 %v5977_v1 }
 0x700   : > { %5416 = vmatpush3.bf16.msra.mxu0 %v5769_v28  ;;  %v5791_v28 = vld [vmem:[%s6188_s26 + $0x64] ss:$8 sps:$4 sm:$0xff]  }
 0x701   : > { %5417 = vmatprep.subr.bf16.mxu0 %v5977_v1 }
 0x704   : > { %5418 = vmatpush3.bf16.msra.mxu0 %v5770_v30  ;;  %v5792_v30 = vld [vmem:[%s6188_s26 + $0x70] ss:$8 sps:$4 sm:$0xff]  }
 0x70a   : > { %v7054_v60 = vpop.f32.mrb[12].mxu0 }
 0x70b   : > { %v5359_v61 = vpop.f32.mrb[13].mxu0 }
 0x70c   : > { %v3520_v62 = vpop.f32.mrb[14].mxu0 }
 0x70d   : > { %v5360_v63 = vpop.f32.mrb[15].mxu0 }
 0x712   : > { %v7056_v0 = vpop.f32.mrb[28].mxu1 }
 0x713   : > { %v5365_v2 = vpop.f32.mrb[29].mxu1 }
 0x714   : > { %v3566_v3 = vpop.f32.mrb[30].mxu1 }
 0x715   : > { %v5366_v4 = vpop.f32.mrb[31].mxu1 }
 0x77d   : > { %v3609_v5 = vpop.f32.mrb[16].mxu0 }
 0x77e   : > { %v5371_v7 = vpop.f32.mrb[17].mxu0 }
 0x77f   : > { %v3612_v8 = vpop.f32.mrb[18].mxu0  ;;  %v5771_v7 = vld [vmem:[%s6188_s26] ss:$8 sps:$4 sm:$0xff]  }
 0x780   : > { %v5372_v11 = vpop.f32.mrb[19].mxu0  ;;  %v5773_v8 = vld [vmem:[%s6188_s26 + $0x4] ss:$8 sps:$4 sm:$0xff]  }
 0x781   : > { %4128 = vmatprep.subr.bf16.mxu1 %v5773_v8  ;;  %v5774_v11 = vld [vmem:[%s6188_s26 + $0x10] ss:$8 sps:$4 sm:$0xff]  }
 0x782   : > { %4129 = vmatpush1.bf16.msra.mxu1 %v5771_v7  ;;  %v4042_v7 = vsub.s32 6, %v6872_v40 }
 0x783   : > { %4130 = vmatprep.subr.bf16.mxu1 %v5776_v10 }
 0x784   : > { %v4043_v8 = vrot.slane %v6876_v43, %v4042_v7  ;;  %v4047_v10 = vrot.slane %v6889_v56, %v4042_v7 }
 0x785   : > { %v3655_v13 = vpop.f32.mrb[32].mxu1 }
 0x786   : > { %v5716_v14 = vpack.i.bf16 %v3655_v13, %v3609_v5  ;;  %v5377_v9 = vpop.f32.mrb[33].mxu1  ;;  %v5860_v5 = vld [vmem:[#allocation2 + $0x8] sm:$0xff]  ;;  %4131 = vmatpush1.bf16.msra.mxu1 %v5774_v11 }
 0x787   : > { %v3658_v16 = vpop.f32.mrb[34].mxu1 }
 0x788   : > { %5717 = vrot.lane.b32.xlu0 %v5716_v14, %s5982_s20  ;;  %v5378_v18 = vpop.f32.mrb[35].mxu1 }
 0x78d   : > { %v3747_v19 = vpop.f32.mrb[36].mxu1 }
 0x78e   : > { %v5389_v39 = vpop.f32.mrb[37].mxu1 }
 0x78f   : > { %v3750_v20 = vpop.f32.mrb[38].mxu1  ;;  %v5777_v39 = vld [vmem:[%s6188_s26 + $0x20] ss:$8 sps:$4 sm:$0xff]  }
 0x790   : > { %v5390_v21 = vpop.f32.mrb[39].mxu1  ;;  %v5782_v20 = vld [vmem:[%s6188_s26 + $0x34] ss:$8 sps:$4 sm:$0xff]  }
 0x791   : > { %v5780_v21 = vld [vmem:[%s6188_s26 + $0x30] ss:$8 sps:$4 sm:$0xff]  }
 0x795   : > { %v3839_v22 = vpop.f32.mrb[40].mxu1 }
 0x796   : > { %v5401_v23 = vpop.f32.mrb[41].mxu1 }
 0x797   : > { %v3842_v24 = vpop.f32.mrb[42].mxu1  ;;  %v5783_v23 = vld [vmem:[%s6188_s26 + $0x40] ss:$8 sps:$4 sm:$0xff]  }
 0x798   : > { %v5402_v25 = vpop.f32.mrb[43].mxu1  ;;  %v5788_v24 = vld [vmem:[%s6188_s26 + $0x54] ss:$8 sps:$4 sm:$0xff]  }
 0x799   : > { %v5786_v25 = vld [vmem:[%s6188_s26 + $0x50] ss:$8 sps:$4 sm:$0xff]  }
 0x7b2   : > { %v3701_v29 = vpop.f32.mrb[20].mxu0 }
 0x7b3   : > { %v5721_v32 = vpack.i.bf16 %v3747_v19, %v3701_v29  ;;  %v5383_v33 = vpop.f32.mrb[21].mxu0  ;;  %v5779_v19 = vld [vmem:[%s6188_s26 + $0x24] ss:$8 sps:$4 sm:$0xff]   ;;  %v5794_v29 = vld [vmem:[%s6188_s26 + $0x74] ss:$8 sps:$4 sm:$0xff]  }
 0x7b4   : > { %v3704_v31 = vpop.f32.mrb[22].mxu0  ;;  %4132 = vmatprep.subr.bf16.mxu1 %v5779_v19 }
 0x7b5   : > { %v5384_v34 = vpop.f32.mrb[23].mxu0  ;;  %5722 = vrot.lane.b32.xlu1 %v5721_v32, %s5981_s24  ;;  %4133 = vmatpush1.bf16.msra.mxu1 %v5777_v39 }
 0x7b6   : > { %4134 = vmatprep.subr.bf16.mxu1 %v5782_v20 }
 0x7b9   : > { %4135 = vmatpush1.bf16.msra.mxu1 %v5780_v21 }
 0x7ba   : > { %v3793_v35 = vpop.f32.mrb[24].mxu0 }
 0x7bb   : > { %v5726_v36 = vpack.i.bf16 %v3839_v22, %v3793_v35  ;;  %v5395_v38 = vpop.f32.mrb[25].mxu0  ;;  %v5785_v22 = vld [vmem:[%s6188_s26 + $0x44] ss:$8 sps:$4 sm:$0xff]  }
 0x7bc   : > { %v3796_v42 = vpop.f32.mrb[26].mxu0  ;;  %4136 = vmatprep.subr.bf16.mxu1 %v5785_v22  ;;  %v4013_v38 = vsub.s32 4, %v6872_v40 }
 0x7bd   : > { %v5396_v44 = vpop.f32.mrb[27].mxu0  ;;  %5727 = vrot.lane.b32.xlu0 %v5726_v36, %s5980_s21  ;;  %4137 = vmatpush1.bf16.msra.mxu1 %v5783_v23 }
 0x7be   : > { %4138 = vmatprep.subr.bf16.mxu1 %v5788_v24 }
 0x7c1   : > { %4139 = vmatpush1.bf16.msra.mxu1 %v5786_v25 }
 0x7c2   : > { %4140 = vmatprep.subr.bf16.mxu1 %v5791_v28 }
 0x7c5   : > { %4141 = vmatpush1.bf16.msra.mxu1 %v5789_v26 }
 0x7c6   : > { %4142 = vmatprep.subr.bf16.mxu1 %v5794_v29 }
 0x7c9   : > { %4143 = vmatpush1.bf16.msra.mxu1 %v5792_v30 }
 0x7fa   : > { %v5718_v45 = vpop.permute.xlu0 %5717 }
 0x7fb   : > { %v5720_v47 = vunpack.i.h.bf16 %v5718_v45  ;;  %v5719_v1 = vunpack.i.l.bf16 %v5718_v45  ;;  %v4014_v45 = vrot.slane %v6876_v43, %v4013_v38 }
 0x7fd   : > { %v3870_v51 = vsel %vm2997_vm3, %v7056_v0, %v5720_v47  ;;  %v3869_v52 = vsel %vm2997_vm3, %v7054_v60, %v5719_v1  ;;  %v5859_v0 = vld [vmem:[#allocation2] sm:$0xff] }
 0x827   : > { %v5723_v46 = vpop.permute.xlu1 %5722 }
 0x828   : > { %v5725_v48 = vunpack.i.h.bf16 %v5723_v46  ;;  %v5724_v49 = vunpack.i.l.bf16 %v5723_v46  ;;  %v4019_v46 = vsub.s32 5, %v6872_v40 }
 0x82a   : > { %v3873_v55 = vsel %vm3871_vm7, %v3870_v51, %v5725_v48  ;;  %v3872_v41 = vsel %vm3871_vm7, %v3869_v52, %v5724_v49  ;;  %v4020_v49 = vrot.slane %v6876_v43, %v4019_v46 }
 0x82f   : > { %v5728_v50 = vpop.permute.xlu0 %5727 }
 0x830   : > { %v5730_v53 = vunpack.i.h.bf16 %v5728_v50  ;;  %v5729_v54 = vunpack.i.l.bf16 %v5728_v50 }
 0x832   : > { %v3876_v37 = vsel %vm3874_vm8, %v3873_v55, %v5730_v53  ;;  %v3875_v57 = vsel %vm3874_vm8, %v3872_v41, %v5729_v54  ;;  %v5795_v54 = vld [vmem:[%s6163_s19 + $0x40] sm:$0xff]   ;;  %v5797_v41 = vld [vmem:[%s6163_s19 + $0x48] sm:$0xff]  }
 0x833   : > { %v3877_v59 = vpack.c.bf16 %v3876_v37, %v3875_v57  ;;  %v5796_v55 = vld [vmem:[%s6163_s19] sm:$0xff]   ;;  %5256 = vmatprep.subr.bf16.mxu0 %v5795_v54  ;;  %v5798_v37 = vld [vmem:[%s6163_s19 + $0x8] sm:$0xff]   ;;  %v5799_v57 = vld [vmem:[%s6163_s19 + $0x50] sm:$0xff]  }
 0x835   : > { %5420 = vmatmul.mubr.bf16.vlgmr.msra.gmra.mrb[28].mxu0 %v3877_v59  ;;  %v5800_v59 = vld [vmem:[%s6163_s19 + $0x10] sm:$0xff]  }
 0x836   : > { %5257 = vmatpush3.bf16.msra.mxu0 %v5796_v55 }
 0x837   : > { %5258 = vmatprep.subr.bf16.mxu0 %v5797_v41 }
 0x83a   : > { %5259 = vmatpush3.bf16.msra.mxu0 %v5798_v37 }
 0x83b   : > { %5260 = vmatprep.subr.bf16.mxu0 %v5799_v57  ;;  %v4243_v57 = vsub.s32 7, %v6872_v40  ;;  %v5862_v40 = vld [vmem:[%s7186_s9] sm:$0xff] (!%p4925_p4)  }
 0x83e   : > { %5261 = vmatpush3.bf16.msra.mxu0 %v5800_v59 }
 0x83f   : > { %5262 = vmatprep.subr.bf16.mxu0 %v5801_v58  ;;  %v5861_v58 = vld [vmem:[%s6193_s8] sm:$0xff] }
 0x908   : > { %v3980_v61 = vpop.f32.mrb[28].mxu0 }
 0x909   : > { %v3981_v62 = vadd.f32 %v3980_v61, %v3897_v27  ;;  %v5421_v63 = vpop.f32.mrb[29].mxu0  ;;  %v5803_v61 = vld [vmem:[%s6163_s19 + $0x60] sm:$0xff]  }
 0x90a   : > { %v3983_v60 = vpop.f32.mrb[30].mxu0  ;;  %v5805_v63 = vld [vmem:[%s6163_s19 + $0x68] sm:$0xff]  }
 0x90b   : > { %v7082_v2 = vadd.f32 %v5859_v0, %v3981_v62  ;;  %v3984_v3 = vadd.f32 %v3983_v60, %v3897_v27  ;;  %v5422_v4 = vpop.f32.mrb[31].mxu0  ;;  %v5802_v27 = vld [vmem:[%s6163_s19 + $0x18] sm:$0xff]   ;;  %v5804_v62 = vld [vmem:[%s6163_s19 + $0x20] sm:$0xff]   ;;  %v5806_v60 = vld [vmem:[%s6163_s19 + $0x28] sm:$0xff]  }
 0x90c   : > { %5263 = vmatpush3.bf16.msra.mxu0 %v5802_v27  ;;  %v5807_v0 = vld [vmem:[%s6163_s19 + $0x70] sm:$0xff]   ;;  %v5809_v4 = vld [vmem:[%s6163_s19 + $0x78] sm:$0xff]   ;;  %v4244_v27 = vrot.slane %v5861_v58, %v4243_v57 }
 0x90d   : > { %v7084_v6 = vadd.f32 %v5860_v5, %v3984_v3  ;;  %3989 = vadd.xlane.f32.xlu1 %v7082_v2  ;;  %5264 = vmatprep.subr.bf16.mxu0 %v5803_v61  ;;  %v5808_v3 = vld [vmem:[%s6163_s19 + $0x30] sm:$0xff]   ;;  %v5810_v5 = vld [vmem:[%s6163_s19 + $0x38] sm:$0xff]  }
 0x90f   : > { %3991 = vadd.xlane.f32.xlu0 %v7084_v6 }
 0x910   : > { %5265 = vmatpush3.bf16.msra.mxu0 %v5804_v62 }
 0x911   : > { %5266 = vmatprep.subr.bf16.mxu0 %v5805_v63 }
 0x914   : > { %5267 = vmatpush3.bf16.msra.mxu0 %v5806_v60 }
 0x915   : > { %5268 = vmatprep.subr.bf16.mxu0 %v5807_v0 }
 0x918   : > { %5269 = vmatpush3.bf16.msra.mxu0 %v5808_v3 }
 0x919   : > { %5270 = vmatprep.subr.bf16.mxu0 %v5809_v4 }
 0x91c   : > { %5271 = vmatpush3.bf16.msra.mxu0 %v5810_v5 }
 0x99a   : > { %v3990_v12 = vpop.xlane.xlu1 %3989 }
 0x99b   : > { %v3993_v13 = vmul.f32 0.0078125, %v3990_v12 }
 0x99c   : > { %v3992_v14 = vpop.xlane.xlu0 %3991 }
 0x99d   : > { %v3995_v9 = vsub.f32 %v7082_v2, %v3993_v13  ;;  %v3994_v16 = vmul.f32 0.0078125, %v3992_v14 }
 0x99f   : > { %v3996_v17 = vsub.f32 %v7084_v6, %v3994_v16  ;;  %v3997_v18 = vmul.f32 %v3995_v9, %v3995_v9 }
 0x9a1   : > { %3999 = vadd.xlane.f32.xlu0 %v3997_v18  ;;  %v3998_v15 = vmul.f32 %v3996_v17, %v3996_v17 }
 0x9a5   : > { %4001 = vadd.xlane.f32.xlu0 %v3998_v15 }
 0xa2e   : > { %v4000_v32 = vpop.xlane.xlu0 %3999 }
 0xa2f   : > { %v4003_v33 = vmul.f32 0.0078125, %v4000_v32 }
 0xa31   : > { %v4005_v31 = vadd.f32 1e-06, %v4003_v33 }
 0xa32   : > { %v4002_v34 = vpop.xlane.xlu0 %4001 }
 0xa33   : > { %5847 = vrsqrt.f32 %v4005_v31  ;;  %v4004_v35 = vmul.f32 0.0078125, %v4002_v34 }
 0xa35   : > { %v4006_v36 = vadd.f32 1e-06, %v4004_v35 }
 0xa37   : > { %5849 = vrsqrt.f32 %v4006_v36 }
 0xa3d   : > { %v5848_v42 = vpop.eup %5847 }
 0xa3e   : > { %v4009_v44 = vmul.f32 %v5848_v42, %v3995_v9 }
 0xa40   : > { %v4015_v48 = vmul.f32 %v4014_v45, %v4009_v44 }
 0xa41   : > { %v5850_v47 = vpop.eup %5849 }
 0xa42   : > { %v4010_v1 = vmul.f32 %v5850_v47, %v3996_v17  ;;  %v4021_v51 = vadd.f32 %v4020_v49, %v4015_v48 }
 0xa44   : > { %v4016_v50 = vmul.f32 %v4014_v45, %v4010_v1 }
 0xa46   : > { %v4022_v52 = vadd.f32 %v4020_v49, %v4016_v50 }
 0xa48   : > { %v4023_v53 = vpack.c.bf16 %v4022_v52, %v4021_v51 }
 0xa4a   : > { %4161 = vmatmul.mubr.bf16.vlgmr.msra.gmra.mrb[44].mxu1 %v4023_v53 }
 0xb1d   : > { %v4162_v11 = vpop.f32.mrb[44].mxu1 }
 0xb1e   : > { %v4163_v12 = vadd.f32 %v4162_v11, %v4043_v8  ;;  %v4164_v13 = vpop.f32.mrb[45].mxu1 }
 0xb1f   : > { %v4165_v14 = vadd.f32 %v4164_v13, %v4047_v10  ;;  %v4166_v9 = vpop.f32.mrb[46].mxu1 }
 0xb20   : > { %v4175_v16 = vmul.f32 0.044715, %v4163_v12  ;;  %v4167_v17 = vadd.f32 %v4166_v9, %v4043_v8  ;;  %v4168_v18 = vpop.f32.mrb[47].mxu1  ;;  %v4171_v47 = vmul.f32 0.5, %v4163_v12  ;;  %v5983_v8 = vmov (!%p4925_p4), 0.0  }
 0xb21   : > { %v4176_v15 = vmul.f32 0.044715, %v4165_v14  ;;  %v4169_v19 = vadd.f32 %v4168_v18, %v4047_v10  ;;  %v4172_v49 = vmul.f32 0.5, %v4165_v14  ;;  %5423 = vmatprep.subr.bf16.mxu0 (!%p4925_p4), %v5983_v8  ;;  %v5865_v18 = vld [vmem:[%s7186_s9 + $0x18] sm:$0xff] (!%p4925_p4)  }
 0xb22   : > { %v4179_v39 = vmul.f32 %v4175_v16, %v4163_v12  ;;  %v4177_v20 = vmul.f32 0.044715, %v4167_v17  ;;  %v4173_v1 = vmul.f32 0.5, %v4167_v17  ;;  %v5863_v16 = vld [vmem:[%s7186_s9 + $0x8] sm:$0xff] (!%p4925_p4)  }
 0xb23   : > { %v4180_v21 = vmul.f32 %v4176_v15, %v4165_v14  ;;  %v4178_v22 = vmul.f32 0.044715, %v4169_v19  ;;  %v4174_v50 = vmul.f32 0.5, %v4169_v19  ;;  %v5866_v15 = vld [vmem:[%s7186_s9 + $0x20] sm:$0xff] (!%p4925_p4)  }
 0xb24   : > { %v4183_v23 = vmul.f32 %v4179_v39, %v4163_v12  ;;  %v4181_v24 = vmul.f32 %v4177_v20, %v4167_v17  ;;  %v5868_v39 = vld [vmem:[%s7186_s9 + $0x30] sm:$0xff] (!%p4925_p4)   ;;  %v5869_v20 = vld [vmem:[%s7186_s9 + $0x38] sm:$0xff] (!%p4925_p4)  }
 0xb25   : > { %v4184_v25 = vmul.f32 %v4180_v21, %v4165_v14  ;;  %v4182_v43 = vmul.f32 %v4178_v22, %v4169_v19 }
 0xb26   : > { %v4187_v26 = vadd.f32 %v4183_v23, %v4163_v12  ;;  %v4185_v56 = vmul.f32 %v4181_v24, %v4167_v17 }
 0xb27   : > { %v4186_v28 = vmul.f32 %v4182_v43, %v4169_v19  ;;  %v4188_v29 = vadd.f32 %v4184_v25, %v4165_v14 }
 0xb28   : > { %v4191_v30 = vmul.f32 0.7978846, %v4187_v26  ;;  %v4189_v32 = vadd.f32 %v4185_v56, %v4167_v17  ;;  %v5864_v17 = vld [vmem:[%s7186_s9 + $0x10] sm:$0xff] (!%p4925_p4)  }
 0xb29   : > { %v4190_v33 = vadd.f32 %v4186_v28, %v4169_v19  ;;  %v4192_v31 = vmul.f32 0.7978846, %v4188_v29  ;;  %v5867_v19 = vld [vmem:[%s7186_s9 + $0x28] sm:$0xff] (!%p4925_p4)   ;;  %v4926_v28 = vld [vmem:[#allocation5] ss:$0 sm:$0xff] (!%p4925_p4) }
 0xb2a   : > { %5851 = vtanh.f32 %v4191_v30  ;;  %v4193_v34 = vmul.f32 0.7978846, %v4189_v32 }
 0xb2b   : > { %v4194_v35 = vmul.f32 0.7978846, %v4190_v33  ;;  %5853 = vtanh.f32 %v4192_v31  ;;  %v4927_v33 = vld [vmem:[#allocation5 + $0x1] ss:$0 sm:$0xff] (!%p4925_p4) }
 0xb2c   : > { %5855 = vtanh.f32 %v4193_v34 }
 0xb2d   : > { %5857 = vtanh.f32 %v4194_v35 }
 0xb34   : > { %v5852_v36 = vpop.eup %5851 }
 0xb35   : > { %v5854_v38 = vpop.eup %5853  ;;  %v4199_v42 = vadd.f32 1.0, %v5852_v36 }
 0xb36   : > { %v5856_v44 = vpop.eup %5855  ;;  %v4200_v45 = vadd.f32 1.0, %v5854_v38  ;;  %v4928_v38 = vld [vmem:[#allocation5 + $0x2] ss:$0 sm:$0xff] (!%p4925_p4) }
 0xb37   : > { %v5858_v46 = vpop.eup %5857  ;;  %v4201_v48 = vadd.f32 1.0, %v5856_v44  ;;  %v4203_v52 = vmul.f32 %v4199_v42, %v4171_v47 }
 0xb38   : > { %v4202_v51 = vadd.f32 1.0, %v5858_v46  ;;  %v4204_v54 = vmul.f32 %v4200_v45, %v4172_v49 }
 0xb39   : > { %v4205_v53 = vmul.f32 %v4201_v48, %v4173_v1 }
 0xb3a   : > { %v4206_v55 = vmul.f32 %v4202_v51, %v4174_v50 }
 0xb3b   : > { %v4207_v41 = vpack.c.bf16 %v4205_v53, %v4203_v52 }
 0xb3c   : > { %v4208_v37 = vpack.c.bf16 %v4206_v55, %v4204_v54 }
 0xb3e   : > { %4373 = vmatprep.mubr.bf16.mxu0 %v4208_v37 }
 0xb3f   : > { %4374 = vmatmul.mubr.bf16.vlgmr.msra.gmra.mrb[32].mxu0 %v4207_v41 }
 0xb40   : > { %5424 = vmatpush3.bf16.msra.mxu0 (!%p4925_p4), %v5862_v40  ;;  %5439 = vmatprep.mubr.msk.bf16.mxu0 (!%p4925_p4), %vm5984_vm9, %v5983_v8 }
 0xb41   : > { %5425 = vmatprep.subr.bf16.mxu0 (!%p4925_p4), %v5983_v8 }
 0xb44   : > { %5426 = vmatpush3.bf16.msra.mxu0 (!%p4925_p4), %v5863_v16 }
 0xb45   : > { %5427 = vmatprep.subr.bf16.mxu0 (!%p4925_p4), %v5983_v8 }
 0xb48   : > { %5428 = vmatpush3.bf16.msra.mxu0 (!%p4925_p4), %v5864_v17 }
 0xb49   : > { %5429 = vmatprep.subr.bf16.mxu0 (!%p4925_p4), %v5983_v8 }
 0xb4c   : > { %5430 = vmatpush3.bf16.msra.mxu0 (!%p4925_p4), %v5865_v18 }
 0xb4d   : > { %5431 = vmatprep.subr.bf16.mxu0 (!%p4925_p4), %v5983_v8 }
 0xb50   : > { %5432 = vmatpush3.bf16.msra.mxu0 (!%p4925_p4), %v5866_v15 }
 0xb51   : > { %5433 = vmatprep.subr.bf16.mxu0 (!%p4925_p4), %v5983_v8 }
 0xb54   : > { %5434 = vmatpush3.bf16.msra.mxu0 (!%p4925_p4), %v5867_v19 }
 0xb55   : > { %5435 = vmatprep.subr.bf16.mxu0 (!%p4925_p4), %v5983_v8 }
 0xb58   : > { %5436 = vmatpush3.bf16.msra.mxu0 (!%p4925_p4), %v5868_v39 }
 0xb59   : > { %5437 = vmatprep.subr.bf16.mxu0 (!%p4925_p4), %v5983_v8 }
 0xb5c   : > { %5438 = vmatpush3.bf16.msra.mxu0 (!%p4925_p4), %v5869_v20 }
 0xc12   : > { %v5272_v59 = vpop.f32.mrb[32].mxu0 }
 0xc13   : > { %v5273_v61 = vpop.f32.mrb[33].mxu0 }
 0xc14   : > { %v5274_v62 = vadd.f32 %v5273_v61, %v5272_v59  ;;  %v5275_v63 = vpop.f32.mrb[34].mxu0 }
 0xc15   : > { %v5276_v60 = vpop.f32.mrb[35].mxu0 }
 0xc16   : > { %v4376_v0 = vadd.f32 %v5274_v62, %v4244_v27  ;;  %v5277_v3 = vadd.f32 %v5276_v60, %v5275_v63  ;;  %4389 = sbr.rel (%p4925_p4) target bundleno = 3632 (0xe30), region = 76 }
 0xc18   : > { %v4382_v4 = vadd.f32 %v4376_v0, %v7082_v2  ;;  %v4379_v5 = vadd.f32 %v5277_v3, %v4244_v27 }
 0xc1a   : > { %4384 = vst [vmem:[#allocation2] sm:$0xff] %v4382_v4  ;;  %v4383_v7 = vadd.f32 %v4379_v5, %v7084_v6  ;;  %4392 = vadd.xlane.f32.xlu0 (!%p4925_p4), %v4382_v4 }
 0xc1c   : > { %4385 = vst [vmem:[#allocation2 + $0x8] sm:$0xff] %v4383_v7 }
 0xc1e   : > { %4394 = vadd.xlane.f32.xlu0 %v4383_v7 }
 0xca7   : > { %v4393_v10 = vpop.xlane.xlu0 %4392 }
 0xca8   : > { %v4396_v2 = vmul.f32 0.0078125, %v4393_v10 }
 0xcaa   : > { %v4398_v11 = vsub.f32 %v4382_v4, %v4396_v2 }
 0xcab   : > { %v4395_v12 = vpop.xlane.xlu0 %4394 }
 0xcac   : > { %v4397_v13 = vmul.f32 0.0078125, %v4395_v12  ;;  %v4400_v6 = vmul.f32 %v4398_v11, %v4398_v11 }
 0xcae   : > { %v4399_v14 = vsub.f32 %v4383_v7, %v4397_v13  ;;  %4402 = vadd.xlane.f32.xlu1 %v4400_v6 }
 0xcb0   : > { %v4401_v9 = vmul.f32 %v4399_v14, %v4399_v14 }
 0xcb2   : > { %4404 = vadd.xlane.f32.xlu1 %v4401_v9 }
 0xd3b   : > { %v4403_v21 = vpop.xlane.xlu1 %4402 }
 0xd3c   : > { %v4406_v22 = vmul.f32 0.0078125, %v4403_v21 }
 0xd3e   : > { %v4408_v23 = vadd.f32 1e-06, %v4406_v22 }
 0xd3f   : > { %v4405_v24 = vpop.xlane.xlu1 %4404 }
 0xd40   : > { %5870 = vrsqrt.f32 %v4408_v23  ;;  %v4407_v25 = vmul.f32 0.0078125, %v4405_v24 }
 0xd42   : > { %v4409_v43 = vadd.f32 1e-06, %v4407_v25 }
 0xd44   : > { %5872 = vrsqrt.f32 %v4409_v43 }
 0xd4a   : > { %v5871_v26 = vpop.eup %5870 }
 0xd4b   : > { %v4412_v56 = vmul.f32 %v5871_v26, %v4398_v11 }
 0xd4d   : > { %v4418_v32 = vmul.f32 %v4926_v28, %v4412_v56 }
 0xd4e   : > { %v5873_v29 = vpop.eup %5872 }
 0xd4f   : > { %v4413_v30 = vmul.f32 %v5873_v29, %v4399_v14  ;;  %v4424_v34 = vadd.f32 %v4927_v33, %v4418_v32 }
 0xd51   : > { %v4419_v31 = vmul.f32 %v4926_v28, %v4413_v30 }
 0xd53   : > { %v4425_v35 = vadd.f32 %v4927_v33, %v4419_v31 }
 0xd55   : > { %v4426_v36 = vpack.c.bf16 %v4425_v35, %v4424_v34 }
 0xd57   : > { %5440 = vmatmul.mubr.bf16.vlgmr.msra.gmra.mrb[0].mxu0 %v4426_v36 }
 0xe2a   : > { %v4530_v42 = vpop.f32.mrb[0].mxu0 }
 0xe2b   : > { %v4531_v44 = vadd.f32 %v4928_v38, %v4530_v42  ;;  %v5441_v45 = vpop.f32.mrb[1].mxu0 }
 0xe2c   : > { %v4533_v46 = vpop.f32.mrb[2].mxu0 }
 0xe2d   : > { %4537 = vst [vmem:[%s7187_s10] sm:$0xff] %v4531_v44  ;;  %v4534_v47 = vadd.f32 %v4928_v38, %v4533_v46  ;;  %v5442_v1 = vpop.f32.mrb[3].mxu0 }
 0xe2f   : > { %4538 = vst [vmem:[%s7187_s10 + $0x8] sm:$0xff] %v4534_v47 }
 0xe30 PF: > { %s7208_s19 = sld [smem:[#allocation9_spill]]  ;;  %p21_p7 = scmp.ge.s32.totalorder %s6062_s18, 4  }
 0xe31   : > { %s7209_s13 = smov %s5962_s14  ;;  %s7210_s14 = smov %s5966_s15 }
 0xe32   : > { %s7212_s16 = smov %s6062_s18  ;;  %23 = sbr.rel (!%p21_p7) target bundleno = 7 (0x7), region = 120 }
 0xe36   : > { %s7211_s15 = smov %s7208_s19 }
 0xe39   :  { %4550 = vsyncpa [#allocation4], 1 }
 0xe3a   :  { %4552 = vsyncpa [#allocation4 + $0x1], 1 }
 0xe3b   :  { %4553 = vsyncpa [#allocation6], 1 }

</bundles_post_ra>
